<compile_context>
chip_gen: v6e
topology: v6e:2x2x1
jax: 0.10.0
libtpu: 0.0.40
codegen_flags: <defaults>
</compile_context>

<pallas_src>
from typing import NamedTuple

import jax
import jax.numpy as jnp
from jax.experimental import pallas as pl
from jax.experimental.pallas import tpu as pltpu

EPS = 1e-5


class _Cfg(NamedTuple):
    halo: int      # per-side halo width (lanes), multiple of 128
    tm: int        # lane tile, multiple of halo (and of 128)
    mp: int        # N*(H+2)*(W+2) padded-image flat length
    nblk: int      # grid size
    mlanes: int    # nblk * tm
    tpad: int      # zero extension on each side of the flat axis (= tm)
    mext: int      # tpad + mlanes + tpad
    shifts: tuple  # 9 static tap shifts in flat padded coordinates
    m_valid: int   # N*H*W (BatchNorm population size per channel)


def _make_cfg(N, H, W):
    halo = 128 * ((W + 3 + 127) // 128)
    tm = halo * max(1, 512 // halo)
    mp = N * (H + 2) * (W + 2)
    nblk = (mp + tm - 1) // tm
    mlanes = nblk * tm
    tpad = tm
    mext = tpad + mlanes + tpad
    shifts = tuple((dh - 1) * (W + 2) + (dw - 1)
                   for dh in range(3) for dw in range(3))
    return _Cfg(halo, tm, mp, nblk, mlanes, tpad, mext, shifts, N * H * W)


# ------------------------------------------------ kernel 1: conv1 + bias + BN stats
def _conv_bias_stats(x_ext, mask_ext, w9, bias, cfg):
    cin, mext = x_ext.shape
    cout = w9.shape[1]
    halo, tm, shifts = cfg.halo, cfg.tm, cfg.shifts
    R = tm // halo
    tpadb = cfg.tpad // tm  # = 1

    def kernel(xl_ref, xc_ref, xr_ref, mc_ref, w_ref, b_ref,
               y_ref, sum_ref, sq_ref):
        j = pl.program_id(0)

        @pl.when(j == 0)
        def _init():
            sum_ref[...] = jnp.zeros_like(sum_ref)
            sq_ref[...] = jnp.zeros_like(sq_ref)

        # halo'd input window: (cin, halo + tm + halo), taps are static slices
        win = jnp.concatenate([xl_ref[...], xc_ref[...], xr_ref[...]], axis=1)
        w_all = w_ref[...]                                   # (9, cout, cin)
        acc = jnp.zeros((cout, tm), jnp.float32)
        for t, s in enumerate(shifts):
            xs = win[:, halo + s: halo + s + tm]             # (cin, tm)
            acc = acc + jnp.dot(w_all[t], xs,
                                preferred_element_type=jnp.float32)
        acc = acc + b_ref[...]                               # (cout, 1) bias
        y_ref[...] = acc                                     # lane-dense store

        valid = mc_ref[...] > 0.5                            # (1, tm)
        yv = jnp.where(valid, acc, 0.0)
        sum_ref[...] += jnp.sum(yv, axis=1, keepdims=True)
        sq_ref[...] += jnp.sum(yv * yv, axis=1, keepdims=True)

    return pl.pallas_call(
        kernel,
        out_shape=(
            jax.ShapeDtypeStruct((cout, mext), jnp.float32),
            jax.ShapeDtypeStruct((cout, 1), jnp.float32),
            jax.ShapeDtypeStruct((cout, 1), jnp.float32),
        ),
        grid=(cfg.nblk,),
        in_specs=[
            pl.BlockSpec((cin, halo), lambda j: (0, (j + tpadb) * R - 1)),
            pl.BlockSpec((cin, tm), lambda j: (0, j + tpadb)),
            pl.BlockSpec((cin, halo), lambda j: (0, (j + tpadb + 1) * R)),
            pl.BlockSpec((1, tm), lambda j: (0, j + tpadb)),
            pl.BlockSpec((9, cout, cin), lambda j: (0, 0, 0)),
            pl.BlockSpec((cout, 1), lambda j: (0, 0)),
        ],
        out_specs=(
            pl.BlockSpec((cout, tm), lambda j: (0, j + tpadb)),
            pl.BlockSpec((cout, 1), lambda j: (0, 0)),
            pl.BlockSpec((cout, 1), lambda j: (0, 0)),
        ),
        compiler_params=pltpu.CompilerParams(
            dimension_semantics=("arbitrary",)),   # stats accumulate over grid
    )(x_ext, x_ext, x_ext, mask_ext, w9, bias)


# ---------------------------- kernel 2: BN1 + ReLU1 (on window) + conv2 + bias + stats
def _bnrelu_conv_bias_stats(y1_ext, mask_ext, s1, q1, g1, be1, w9, bias, cfg):
    cmid, mext = y1_ext.shape
    cout = w9.shape[1]
    halo, tm, shifts = cfg.halo, cfg.tm, cfg.shifts
    R = tm // halo
    tpadb = cfg.tpad // tm
    inv_m = 1.0 / float(cfg.m_valid)

    def kernel(yl_ref, yc_ref, yr_ref, ml_ref, mc_ref, mr_ref,
               s1_ref, q1_ref, g1_ref, be1_ref, w_ref, b_ref,
               y_ref, sum_ref, sq_ref):
        j = pl.program_id(0)

        @pl.when(j == 0)
        def _init():
            sum_ref[...] = jnp.zeros_like(sum_ref)
            sq_ref[...] = jnp.zeros_like(sq_ref)

        # BN1 scale/shift derived in-kernel from the fused batch statistics.
        mean = s1_ref[...] * inv_m                            # (cmid, 1)
        var = jnp.maximum(q1_ref[...] * inv_m - mean * mean, 0.0)
        scale = g1_ref[...] * jax.lax.rsqrt(var + EPS)
        shift = be1_ref[...] - mean * scale

        win = jnp.concatenate([yl_ref[...], yc_ref[...], yr_ref[...]], axis=1)
        mwin = jnp.concatenate([ml_ref[...], mc_ref[...], mr_ref[...]], axis=1)
        # BN+ReLU applied once to the whole halo'd window (hoisted out of the
        # tap loop). Padding-ring / out-of-image lanes are forced to zero so
        # they behave as conv2's zero padding (and kill any stale-HBM garbage).
        act = jnp.maximum(win * scale + shift, 0.0)
        act = jnp.where(mwin > 0.5, act, 0.0)

        w_all = w_ref[...]                                    # (9, cout, cmid)
        acc = jnp.zeros((cout, tm), jnp.float32)
        for t, s in enumerate(shifts):
            xs = act[:, halo + s: halo + s + tm]              # (cmid, tm)
            acc = acc + jnp.dot(w_all[t], xs,
                                preferred_element_type=jnp.float32)
        acc = acc + b_ref[...]
        y_ref[...] = acc

        valid = mc_ref[...] > 0.5
        yv = jnp.where(valid, acc, 0.0)
        sum_ref[...] += jnp.sum(yv, axis=1, keepdims=True)
        sq_ref[...] += jnp.sum(yv * yv, axis=1, keepdims=True)

    return pl.pallas_call(
        kernel,
        out_shape=(
            jax.ShapeDtypeStruct((cout, mext), jnp.float32),
            jax.ShapeDtypeStruct((cout, 1), jnp.float32),
            jax.ShapeDtypeStruct((cout, 1), jnp.float32),
        ),
        grid=(cfg.nblk,),
        in_specs=[
            pl.BlockSpec((cmid, halo), lambda j: (0, (j + tpadb) * R - 1)),
            pl.BlockSpec((cmid, tm), lambda j: (0, j + tpadb)),
            pl.BlockSpec((cmid, halo), lambda j: (0, (j + tpadb + 1) * R)),
            pl.BlockSpec((1, halo), lambda j: (0, (j + tpadb) * R - 1)),
            pl.BlockSpec((1, tm), lambda j: (0, j + tpadb)),
            pl.BlockSpec((1, halo), lambda j: (0, (j + tpadb + 1) * R)),
            pl.BlockSpec((cmid, 1), lambda j: (0, 0)),
            pl.BlockSpec((cmid, 1), lambda j: (0, 0)),
            pl.BlockSpec((cmid, 1), lambda j: (0, 0)),
            pl.BlockSpec((cmid, 1), lambda j: (0, 0)),
            pl.BlockSpec((9, cout, cmid), lambda j: (0, 0, 0)),
            pl.BlockSpec((cout, 1), lambda j: (0, 0)),
        ],
        out_specs=(
            pl.BlockSpec((cout, tm), lambda j: (0, j + tpadb)),
            pl.BlockSpec((cout, 1), lambda j: (0, 0)),
            pl.BlockSpec((cout, 1), lambda j: (0, 0)),
        ),
        compiler_params=pltpu.CompilerParams(
            dimension_semantics=("arbitrary",)),
    )(y1_ext, y1_ext, y1_ext, mask_ext, mask_ext, mask_ext,
      s1, q1, g1, be1, w9, bias)


# ------------------------------------------------ kernel 3: final BN2 + ReLU2
def _bnrelu_apply(y_ext, s, q, g, be, cfg):
    cout, _ = y_ext.shape
    tm = cfg.tm
    tpadb = cfg.tpad // tm
    inv_m = 1.0 / float(cfg.m_valid)

    def kernel(y_ref, s_ref, q_ref, g_ref, be_ref, o_ref):
        mean = s_ref[...] * inv_m
        var = jnp.maximum(q_ref[...] * inv_m - mean * mean, 0.0)
        scale = g_ref[...] * jax.lax.rsqrt(var + EPS)
        shift = be_ref[...] - mean * scale
        o_ref[...] = jnp.maximum(y_ref[...] * scale + shift, 0.0)

    return pl.pallas_call(
        kernel,
        out_shape=jax.ShapeDtypeStruct((cout, cfg.mlanes), jnp.float32),
        grid=(cfg.nblk,),
        in_specs=[
            pl.BlockSpec((cout, tm), lambda j: (0, j + tpadb)),
            pl.BlockSpec((cout, 1), lambda j: (0, 0)),
            pl.BlockSpec((cout, 1), lambda j: (0, 0)),
            pl.BlockSpec((cout, 1), lambda j: (0, 0)),
            pl.BlockSpec((cout, 1), lambda j: (0, 0)),
        ],
        out_specs=pl.BlockSpec((cout, tm), lambda j: (0, j)),
        compiler_params=pltpu.CompilerParams(
            dimension_semantics=("parallel",)),
    )(y_ext, s, q, g, be)


# -------------------------------------------------------------------- layout glue
def _to_ext_layout(x_nchw, cfg):
    """NCHW -> (C, Mext): channels on sublanes, padded flat spatial on lanes."""
    N, C, H, W = x_nchw.shape
    xp = jnp.pad(jnp.transpose(x_nchw, (1, 0, 2, 3)),
                 ((0, 0), (0, 0), (1, 1), (1, 1)))            # (C, N, H+2, W+2)
    flat = xp.reshape(C, cfg.mp)
    return jnp.pad(flat, ((0, 0), (cfg.tpad, cfg.mext - cfg.tpad - cfg.mp)))


def _valid_mask(N, H, W, cfg):
    m = jnp.pad(jnp.ones((1, N, H, W), jnp.float32),
                ((0, 0), (0, 0), (1, 1), (1, 1)))
    flat = m.reshape(1, cfg.mp)
    return jnp.pad(flat, ((0, 0), (cfg.tpad, cfg.mext - cfg.tpad - cfg.mp)))


def _from_ext_layout(y, N, H, W, cfg):
    C = y.shape[0]
    img = y[:, :cfg.mp].reshape(C, N, H + 2, W + 2)[:, :, 1:H + 1, 1:W + 1]
    return jnp.transpose(img, (1, 0, 2, 3))                   # -> NCHW


def double_conv_forward(x_nchw, params):
    """Forward pass of DoubleConv. Input/output are NCHW like PyTorch."""
    N, _, H, W = x_nchw.shape
    cfg = _make_cfg(N, H, W)
    x_ext = _to_ext_layout(x_nchw.astype(jnp.float32), cfg)
    mask = _valid_mask(N, H, W, cfg)

    y1, s1, q1 = _conv_bias_stats(x_ext, mask, params["w1"], params["b1"], cfg)
    y2, s2, q2 = _bnrelu_conv_bias_stats(y1, mask, s1, q1,
                                         params["g1"], params["be1"],
                                         params["w2"], params["b2"], cfg)
    out = _bnrelu_apply(y2, s2, q2, params["g2"], params["be2"], cfg)
    return _from_ext_layout(out, N, H, W, cfg)


# -------------------------------------------------------------------- params
def torch_conv_weight_to_taps(w):
    """PyTorch Conv2d weight (Cout, Cin, 3, 3) -> (9, Cout, Cin), tap-major."""
    cout, cin, kh, kw = w.shape
    return jnp.transpose(w, (2, 3, 0, 1)).reshape(kh * kw, cout, cin)


def init_params(key, in_channels, out_channels, mid_channels=None):
    if not mid_channels:
        mid_channels = out_channels
    k1, k2, k3, k4 = jax.random.split(key, 4)
    w1 = jax.random.normal(k1, (mid_channels, in_channels, 3, 3), jnp.float32) * 0.1
    b1 = jax.random.normal(k2, (mid_channels, 1), jnp.float32) * 0.01
    w2 = jax.random.normal(k3, (out_channels, mid_channels, 3, 3), jnp.float32) * 0.1
    b2 = jax.random.normal(k4, (out_channels, 1), jnp.float32) * 0.01
    return {
        "w1": torch_conv_weight_to_taps(w1), "b1": b1,
        "g1": jnp.ones((mid_channels, 1), jnp.float32),
        "be1": jnp.zeros((mid_channels, 1), jnp.float32),
        "w2": torch_conv_weight_to_taps(w2), "b2": b2,
        "g2": jnp.ones((out_channels, 1), jnp.float32),
        "be2": jnp.zeros((out_channels, 1), jnp.float32),
        # torch-layout weights kept only for the pure-JAX reference check
        "w1_torch": w1, "w2_torch": w2,
    }


# -------------------------------------------------------------------- reference
def _reference_double_conv(x, p, eps=EPS):
    def block(x, w, b, g, be):
        cout = w.shape[0]
        y = jax.lax.conv_general_dilated(
            x, w, window_strides=(1, 1), padding=((1, 1), (1, 1)),
            dimension_numbers=("NCHW", "OIHW", "NCHW"),
            precision=jax.lax.Precision.HIGHEST)
        y = y + b.reshape(1, cout, 1, 1)
        mean = jnp.mean(y, axis=(0, 2, 3), keepdims=True)
        var = jnp.mean((y - mean) ** 2, axis=(0, 2, 3), keepdims=True)
        yn = (y - mean) * jax.lax.rsqrt(var + eps)
        return jnp.maximum(yn * g.reshape(1, cout, 1, 1) +
                           be.reshape(1, cout, 1, 1), 0.0)

    x = block(x, p["w1_torch"], p["b1"], p["g1"], p["be1"])
    x = block(x, p["w2_torch"], p["b2"], p["g2"], p["be2"])
    return x


if __name__ == "__main__":
    key = jax.random.PRNGKey(0)
    kx, kp = jax.random.split(key)

    N, Cin, H, W = 2, 4, 16, 16
    Cout = 8
    x = jax.random.normal(kx, (N, Cin, H, W), jnp.float32)
    params = init_params(kp, Cin, Cout)

    fwd = jax.jit(double_conv_forward)
    out = jax.block_until_ready(fwd(x, params))

    assert out.shape == (N, Cout, H, W), out.shape
    assert bool(jnp.all(jnp.isfinite(out)))
    assert bool(jnp.all(out >= 0.0))                       # ReLU output

    ref = _reference_double_conv(x, params)
    max_err = float(jnp.max(jnp.abs(out - ref)))
    assert max_err < 0.1, f"mismatch vs pure-JAX reference: {max_err}"

    print("KERNEL_OK")
</pallas_src>

<mosaic_0001>
module attributes {stable_mosaic.version = 11 : i64} {
  func.func @kernel(%arg0: i32, %arg1: memref<4x128xf32, #tpu.memory_space<vmem>>, %arg2: memref<4x512xf32, #tpu.memory_space<vmem>>, %arg3: memref<4x128xf32, #tpu.memory_space<vmem>>, %arg4: memref<1x512xf32, #tpu.memory_space<vmem>>, %arg5: memref<9x8x4xf32, #tpu.memory_space<vmem>>, %arg6: memref<8x1xf32, #tpu.memory_space<vmem>>, %arg7: memref<8x512xf32, #tpu.memory_space<vmem>>, %arg8: memref<8x1xf32, #tpu.memory_space<vmem>>, %arg9: memref<8x1xf32, #tpu.memory_space<vmem>>) attributes {dimension_semantics = [#tpu.dimension_semantics<arbitrary>], iteration_bounds = array<i64: 2>, scalar_prefetch = 0 : i64, scratch_operands = 0 : i64, tpu.core_type = #tpu.core_type<tc>, window_params = [{transform_indices = @transform_0, window_bounds = array<i64: 4, 128>}, {transform_indices = @transform_1, window_bounds = array<i64: 4, 512>}, {transform_indices = @transform_2, window_bounds = array<i64: 4, 128>}, {transform_indices = @transform_3, window_bounds = array<i64: 1, 512>}, {pipeline_mode = #tpu.pipeline_mode<synchronous>, transform_indices = @transform_4, window_bounds = array<i64: 9, 8, 4>}, {pipeline_mode = #tpu.pipeline_mode<synchronous>, transform_indices = @transform_5, window_bounds = array<i64: 8, 1>}, {transform_indices = @transform_6, window_bounds = array<i64: 8, 512>}, {pipeline_mode = #tpu.pipeline_mode<synchronous>, transform_indices = @transform_7, window_bounds = array<i64: 8, 1>}, {pipeline_mode = #tpu.pipeline_mode<synchronous>, transform_indices = @transform_8, window_bounds = array<i64: 8, 1>}]} {
    %c0_i32 = arith.constant 0 : i32
    %0 = arith.cmpi eq, %arg0, %c0_i32 : i32
    %1 = arith.extui %0 : i1 to i32
    %c0_i32_0 = arith.constant 0 : i32
    %2 = arith.cmpi ne, %1, %c0_i32_0 : i32
    scf.if %2 {
      %cst_36 = arith.constant 0.000000e+00 : f32
      %76 = vector.broadcast %cst_36 : f32 to vector<8x1xf32>
      %c0_37 = arith.constant 0 : index
      %c0_38 = arith.constant 0 : index
      %77 = vector.load %arg8[%c0_37, %c0_38] : memref<8x1xf32, #tpu.memory_space<vmem>>, vector<8x1xf32>
      tpu.vector_store %arg8[%c0_37, %c0_38], %76 {strides = array<i32>} : memref<8x1xf32, #tpu.memory_space<vmem>>, vector<8x1xf32>,
      %cst_39 = arith.constant 0.000000e+00 : f32
      %78 = vector.broadcast %cst_39 : f32 to vector<8x1xf32>
      %c0_40 = arith.constant 0 : index
      %c0_41 = arith.constant 0 : index
      %79 = vector.load %arg9[%c0_40, %c0_41] : memref<8x1xf32, #tpu.memory_space<vmem>>, vector<8x1xf32>
      tpu.vector_store %arg9[%c0_40, %c0_41], %78 {strides = array<i32>} : memref<8x1xf32, #tpu.memory_space<vmem>>, vector<8x1xf32>,
    } else {
    }
    %c0 = arith.constant 0 : index
    %c0_1 = arith.constant 0 : index
    %3 = vector.load %arg1[%c0, %c0_1] : memref<4x128xf32, #tpu.memory_space<vmem>>, vector<4x128xf32>
    %c0_2 = arith.constant 0 : index
    %c0_3 = arith.constant 0 : index
    %4 = vector.load %arg2[%c0_2, %c0_3] : memref<4x512xf32, #tpu.memory_space<vmem>>, vector<4x512xf32>
    %c0_4 = arith.constant 0 : index
    %c0_5 = arith.constant 0 : index
    %5 = vector.load %arg3[%c0_4, %c0_5] : memref<4x128xf32, #tpu.memory_space<vmem>>, vector<4x128xf32>
    %6 = tpu.concatenate %3, %4, %5 in 1 : vector<4x128xf32>, vector<4x512xf32>, vector<4x128xf32> -> vector<4x768xf32>
    %c0_6 = arith.constant 0 : index
    %c0_7 = arith.constant 0 : index
    %c0_8 = arith.constant 0 : index
    %7 = vector.load %arg5[%c0_6, %c0_7, %c0_8] : memref<9x8x4xf32, #tpu.memory_space<vmem>>, vector<9x8x4xf32>
    %cst = arith.constant 0.000000e+00 : f32
    %8 = vector.broadcast %cst : f32 to vector<8x512xf32>
    %9 = vector.extract_strided_slice %6 {offsets = [0, 109], sizes = [4, 512], strides = [1, 1]} : vector<4x768xf32> to vector<4x512xf32>
    %10 = vector.extract_strided_slice %7 {offsets = [0, 0, 0], sizes = [1, 8, 4], strides = [1, 1, 1]} : vector<9x8x4xf32> to vector<1x8x4xf32>
    %11 = vector.shape_cast %10 : vector<1x8x4xf32> to vector<8x4xf32>
    %cst_9 = arith.constant dense<0.000000e+00> : vector<8x512xf32>
    %12 = tpu.matmul %11, %9, %cst_9 {dimension_numbers = #tpu.dot_dimension_numbers<[1], [0], [0], [1], [0, 0, 1, 1], [], []>} : vector<8x4xf32>, vector<4x512xf32>, vector<8x512xf32> -> vector<8x512xf32>
    %13 = arith.addf %8, %12 : vector<8x512xf32>
    %14 = vector.extract_strided_slice %6 {offsets = [0, 110], sizes = [4, 512], strides = [1, 1]} : vector<4x768xf32> to vector<4x512xf32>
    %15 = vector.extract_strided_slice %7 {offsets = [1, 0, 0], sizes = [1, 8, 4], strides = [1, 1, 1]} : vector<9x8x4xf32> to vector<1x8x4xf32>
    %16 = vector.shape_cast %15 : vector<1x8x4xf32> to vector<8x4xf32>
    %cst_10 = arith.constant dense<0.000000e+00> : vector<8x512xf32>
    %17 = tpu.matmul %16, %14, %cst_10 {dimension_numbers = #tpu.dot_dimension_numbers<[1], [0], [0], [1], [0, 0, 1, 1], [], []>} : vector<8x4xf32>, vector<4x512xf32>, vector<8x512xf32> -> vector<8x512xf32>
    %18 = arith.addf %13, %17 : vector<8x512xf32>
    %19 = vector.extract_strided_slice %6 {offsets = [0, 111], sizes = [4, 512], strides = [1, 1]} : vector<4x768xf32> to vector<4x512xf32>
    %20 = vector.extract_strided_slice %7 {offsets = [2, 0, 0], sizes = [1, 8, 4], strides = [1, 1, 1]} : vector<9x8x4xf32> to vector<1x8x4xf32>
    %21 = vector.shape_cast %20 : vector<1x8x4xf32> to vector<8x4xf32>
    %cst_11 = arith.constant dense<0.000000e+00> : vector<8x512xf32>
    %22 = tpu.matmul %21, %19, %cst_11 {dimension_numbers = #tpu.dot_dimension_numbers<[1], [0], [0], [1], [0, 0, 1, 1], [], []>} : vector<8x4xf32>, vector<4x512xf32>, vector<8x512xf32> -> vector<8x512xf32>
    %23 = arith.addf %18, %22 : vector<8x512xf32>
    %24 = vector.extract_strided_slice %6 {offsets = [0, 127], sizes = [4, 512], strides = [1, 1]} : vector<4x768xf32> to vector<4x512xf32>
    %25 = vector.extract_strided_slice %7 {offsets = [3, 0, 0], sizes = [1, 8, 4], strides = [1, 1, 1]} : vector<9x8x4xf32> to vector<1x8x4xf32>
    %26 = vector.shape_cast %25 : vector<1x8x4xf32> to vector<8x4xf32>
    %cst_12 = arith.constant dense<0.000000e+00> : vector<8x512xf32>
    %27 = tpu.matmul %26, %24, %cst_12 {dimension_numbers = #tpu.dot_dimension_numbers<[1], [0], [0], [1], [0, 0, 1, 1], [], []>} : vector<8x4xf32>, vector<4x512xf32>, vector<8x512xf32> -> vector<8x512xf32>
    %28 = arith.addf %23, %27 : vector<8x512xf32>
    %29 = vector.extract_strided_slice %6 {offsets = [0, 128], sizes = [4, 512], strides = [1, 1]} : vector<4x768xf32> to vector<4x512xf32>
    %30 = vector.extract_strided_slice %7 {offsets = [4, 0, 0], sizes = [1, 8, 4], strides = [1, 1, 1]} : vector<9x8x4xf32> to vector<1x8x4xf32>
    %31 = vector.shape_cast %30 : vector<1x8x4xf32> to vector<8x4xf32>
    %cst_13 = arith.constant dense<0.000000e+00> : vector<8x512xf32>
    %32 = tpu.matmul %31, %29, %cst_13 {dimension_numbers = #tpu.dot_dimension_numbers<[1], [0], [0], [1], [0, 0, 1, 1], [], []>} : vector<8x4xf32>, vector<4x512xf32>, vector<8x512xf32> -> vector<8x512xf32>
    %33 = arith.addf %28, %32 : vector<8x512xf32>
    %34 = vector.extract_strided_slice %6 {offsets = [0, 129], sizes = [4, 512], strides = [1, 1]} : vector<4x768xf32> to vector<4x512xf32>
    %35 = vector.extract_strided_slice %7 {offsets = [5, 0, 0], sizes = [1, 8, 4], strides = [1, 1, 1]} : vector<9x8x4xf32> to vector<1x8x4xf32>
    %36 = vector.shape_cast %35 : vector<1x8x4xf32> to vector<8x4xf32>
    %cst_14 = arith.constant dense<0.000000e+00> : vector<8x512xf32>
    %37 = tpu.matmul %36, %34, %cst_14 {dimension_numbers = #tpu.dot_dimension_numbers<[1], [0], [0], [1], [0, 0, 1, 1], [], []>} : vector<8x4xf32>, vector<4x512xf32>, vector<8x512xf32> -> vector<8x512xf32>
    %38 = arith.addf %33, %37 : vector<8x512xf32>
    %39 = vector.extract_strided_slice %6 {offsets = [0, 145], sizes = [4, 512], strides = [1, 1]} : vector<4x768xf32> to vector<4x512xf32>
    %40 = vector.extract_strided_slice %7 {offsets = [6, 0, 0], sizes = [1, 8, 4], strides = [1, 1, 1]} : vector<9x8x4xf32> to vector<1x8x4xf32>
    %41 = vector.shape_cast %40 : vector<1x8x4xf32> to vector<8x4xf32>
    %cst_15 = arith.constant dense<0.000000e+00> : vector<8x512xf32>
    %42 = tpu.matmul %41, %39, %cst_15 {dimension_numbers = #tpu.dot_dimension_numbers<[1], [0], [0], [1], [0, 0, 1, 1], [], []>} : vector<8x4xf32>, vector<4x512xf32>, vector<8x512xf32> -> vector<8x512xf32>
    %43 = arith.addf %38, %42 : vector<8x512xf32>
    %44 = vector.extract_strided_slice %6 {offsets = [0, 146], sizes = [4, 512], strides = [1, 1]} : vector<4x768xf32> to vector<4x512xf32>
    %45 = vector.extract_strided_slice %7 {offsets = [7, 0, 0], sizes = [1, 8, 4], strides = [1, 1, 1]} : vector<9x8x4xf32> to vector<1x8x4xf32>
    %46 = vector.shape_cast %45 : vector<1x8x4xf32> to vector<8x4xf32>
    %cst_16 = arith.constant dense<0.000000e+00> : vector<8x512xf32>
    %47 = tpu.matmul %46, %44, %cst_16 {dimension_numbers = #tpu.dot_dimension_numbers<[1], [0], [0], [1], [0, 0, 1, 1], [], []>} : vector<8x4xf32>, vector<4x512xf32>, vector<8x512xf32> -> vector<8x512xf32>
    %48 = arith.addf %43, %47 : vector<8x512xf32>
    %49 = vector.extract_strided_slice %6 {offsets = [0, 147], sizes = [4, 512], strides = [1, 1]} : vector<4x768xf32> to vector<4x512xf32>
    %50 = vector.extract_strided_slice %7 {offsets = [8, 0, 0], sizes = [1, 8, 4], strides = [1, 1, 1]} : vector<9x8x4xf32> to vector<1x8x4xf32>
    %51 = vector.shape_cast %50 : vector<1x8x4xf32> to vector<8x4xf32>
    %cst_17 = arith.constant dense<0.000000e+00> : vector<8x512xf32>
    %52 = tpu.matmul %51, %49, %cst_17 {dimension_numbers = #tpu.dot_dimension_numbers<[1], [0], [0], [1], [0, 0, 1, 1], [], []>} : vector<8x4xf32>, vector<4x512xf32>, vector<8x512xf32> -> vector<8x512xf32>
    %53 = arith.addf %48, %52 : vector<8x512xf32>
    %c0_18 = arith.constant 0 : index
    %c0_19 = arith.constant 0 : index
    %54 = vector.load %arg6[%c0_18, %c0_19] : memref<8x1xf32, #tpu.memory_space<vmem>>, vector<8x1xf32>
    %55 = vector.broadcast %54 : vector<8x1xf32> to vector<8x512xf32>
    %56 = arith.addf %53, %55 : vector<8x512xf32>
    %c0_20 = arith.constant 0 : index
    %c0_21 = arith.constant 0 : index
    %57 = vector.load %arg7[%c0_20, %c0_21] : memref<8x512xf32, #tpu.memory_space<vmem>>, vector<8x512xf32>
    tpu.vector_store %arg7[%c0_20, %c0_21], %56 {strides = array<i32>} : memref<8x512xf32, #tpu.memory_space<vmem>>, vector<8x512xf32>,
    %c0_22 = arith.constant 0 : index
    %c0_23 = arith.constant 0 : index
    %58 = vector.load %arg4[%c0_22, %c0_23] : memref<1x512xf32, #tpu.memory_space<vmem>>, vector<1x512xf32>
    %cst_24 = arith.constant 5.000000e-01 : f32
    %59 = vector.broadcast %cst_24 : f32 to vector<1x512xf32>
    %60 = arith.cmpf ogt, %58, %59 : vector<1x512xf32>
    %cst_25 = arith.constant 0.000000e+00 : f32
    %61 = vector.shape_cast %60 : vector<1x512xi1> to vector<1x512xi1>
    %62 = vector.broadcast %61 : vector<1x512xi1> to vector<8x512xi1>
    %63 = vector.broadcast %cst_25 : f32 to vector<8x512xf32>
    %64 = arith.select %62, %56, %63 : vector<8x512xi1>, vector<8x512xf32>
    %c0_26 = arith.constant 0 : index
    %c0_27 = arith.constant 0 : index
    %65 = vector.load %arg8[%c0_26, %c0_27] : memref<8x1xf32, #tpu.memory_space<vmem>>, vector<8x1xf32>
    %cst_28 = arith.constant dense<0.000000e+00> : vector<8xf32>
    %66 = vector.multi_reduction <add>, %64, %cst_28 [1] : vector<8x512xf32> to vector<8xf32>
    %67 = vector.shape_cast %66 : vector<8xf32> to vector<8x1xf32>
    %68 = arith.addf %65, %67 : vector<8x1xf32>
    %c0_29 = arith.constant 0 : index
    %c0_30 = arith.constant 0 : index
    %69 = vector.load %arg8[%c0_29, %c0_30] : memref<8x1xf32, #tpu.memory_space<vmem>>, vector<8x1xf32>
    tpu.vector_store %arg8[%c0_29, %c0_30], %68 {strides = array<i32>} : memref<8x1xf32, #tpu.memory_space<vmem>>, vector<8x1xf32>,
    %c0_31 = arith.constant 0 : index
    %c0_32 = arith.constant 0 : index
    %70 = vector.load %arg9[%c0_31, %c0_32] : memref<8x1xf32, #tpu.memory_space<vmem>>, vector<8x1xf32>
    %71 = arith.mulf %64, %64 : vector<8x512xf32>
    %cst_33 = arith.constant dense<0.000000e+00> : vector<8xf32>
    %72 = vector.multi_reduction <add>, %71, %cst_33 [1] : vector<8x512xf32> to vector<8xf32>
    %73 = vector.shape_cast %72 : vector<8xf32> to vector<8x1xf32>
    %74 = arith.addf %70, %73 : vector<8x1xf32>
    %c0_34 = arith.constant 0 : index
    %c0_35 = arith.constant 0 : index
    %75 = vector.load %arg9[%c0_34, %c0_35] : memref<8x1xf32, #tpu.memory_space<vmem>>, vector<8x1xf32>
    tpu.vector_store %arg9[%c0_34, %c0_35], %74 {strides = array<i32>} : memref<8x1xf32, #tpu.memory_space<vmem>>, vector<8x1xf32>,
    return
  }
  func.func @transform_0(%arg0: i32) -> (i32, i32) {
    %c1_i32 = arith.constant 1 : i32
    %0 = arith.addi %arg0, %c1_i32 : i32
    %c4_i32 = arith.constant 4 : i32
    %1 = arith.muli %0, %c4_i32 : i32
    %c1_i32_0 = arith.constant 1 : i32
    %2 = arith.subi %1, %c1_i32_0 : i32
    %c0_i32 = arith.constant 0 : i32
    %c0_i32_1 = arith.constant 0 : i32
    return %c0_i32, %2 : i32, i32
  }
  func.func @transform_1(%arg0: i32) -> (i32, i32) {
    %c1_i32 = arith.constant 1 : i32
    %0 = arith.addi %arg0, %c1_i32 : i32
    %c0_i32 = arith.constant 0 : i32
    %c0_i32_0 = arith.constant 0 : i32
    return %c0_i32, %0 : i32, i32
  }
  func.func @transform_2(%arg0: i32) -> (i32, i32) {
    %c1_i32 = arith.constant 1 : i32
    %0 = arith.addi %arg0, %c1_i32 : i32
    %c1_i32_0 = arith.constant 1 : i32
    %1 = arith.addi %0, %c1_i32_0 : i32
    %c4_i32 = arith.constant 4 : i32
    %2 = arith.muli %1, %c4_i32 : i32
    %c0_i32 = arith.constant 0 : i32
    %c0_i32_1 = arith.constant 0 : i32
    return %c0_i32, %2 : i32, i32
  }
  func.func @transform_3(%arg0: i32) -> (i32, i32) {
    %c1_i32 = arith.constant 1 : i32
    %0 = arith.addi %arg0, %c1_i32 : i32
    %c0_i32 = arith.constant 0 : i32
    %c0_i32_0 = arith.constant 0 : i32
    return %c0_i32, %0 : i32, i32
  }
  func.func @transform_4(%arg0: i32) -> (i32, i32, i32) {
    %c0_i32 = arith.constant 0 : i32
    %c0_i32_0 = arith.constant 0 : i32
    %c0_i32_1 = arith.constant 0 : i32
    %c0_i32_2 = arith.constant 0 : i32
    return %c0_i32, %c0_i32_0, %c0_i32_1 : i32, i32, i32
  }
  func.func @transform_5(%arg0: i32) -> (i32, i32) {
    %c0_i32 = arith.constant 0 : i32
    %c0_i32_0 = arith.constant 0 : i32
    %c0_i32_1 = arith.constant 0 : i32
    return %c0_i32, %c0_i32_0 : i32, i32
  }
  func.func @transform_6(%arg0: i32) -> (i32, i32) {
    %c1_i32 = arith.constant 1 : i32
    %0 = arith.addi %arg0, %c1_i32 : i32
    %c0_i32 = arith.constant 0 : i32
    %c0_i32_0 = arith.constant 0 : i32
    return %c0_i32, %0 : i32, i32
  }
  func.func @transform_7(%arg0: i32) -> (i32, i32) {
    %c0_i32 = arith.constant 0 : i32
    %c0_i32_0 = arith.constant 0 : i32
    %c0_i32_1 = arith.constant 0 : i32
    return %c0_i32, %c0_i32_0 : i32, i32
  }
  func.func @transform_8(%arg0: i32) -> (i32, i32) {
    %c0_i32 = arith.constant 0 : i32
    %c0_i32_0 = arith.constant 0 : i32
    %c0_i32_1 = arith.constant 0 : i32
    return %c0_i32, %c0_i32_0 : i32, i32
  }
}

module attributes {stable_mosaic.version = 11 : i64} {
  func.func @kernel(%arg0: i32, %arg1: memref<8x512xf32, #tpu.memory_space<vmem>>, %arg2: memref<8x1xf32, #tpu.memory_space<vmem>>, %arg3: memref<8x1xf32, #tpu.memory_space<vmem>>, %arg4: memref<8x1xf32, #tpu.memory_space<vmem>>, %arg5: memref<8x1xf32, #tpu.memory_space<vmem>>, %arg6: memref<8x512xf32, #tpu.memory_space<vmem>>) attributes {dimension_semantics = [#tpu.dimension_semantics<parallel>], iteration_bounds = array<i64: 2>, scalar_prefetch = 0 : i64, scratch_operands = 0 : i64, tpu.core_type = #tpu.core_type<tc>, window_params = [{transform_indices = @transform_0, window_bounds = array<i64: 8, 512>}, {pipeline_mode = #tpu.pipeline_mode<synchronous>, transform_indices = @transform_1, window_bounds = array<i64: 8, 1>}, {pipeline_mode = #tpu.pipeline_mode<synchronous>, transform_indices = @transform_2, window_bounds = array<i64: 8, 1>}, {pipeline_mode = #tpu.pipeline_mode<synchronous>, transform_indices = @transform_3, window_bounds = array<i64: 8, 1>}, {pipeline_mode = #tpu.pipeline_mode<synchronous>, transform_indices = @transform_4, window_bounds = array<i64: 8, 1>}, {transform_indices = @transform_5, window_bounds = array<i64: 8, 512>}]} {
    %c0 = arith.constant 0 : index
    %c0_0 = arith.constant 0 : index
    %0 = vector.load %arg2[%c0, %c0_0] : memref<8x1xf32, #tpu.memory_space<vmem>>, vector<8x1xf32>
    %cst = arith.constant 0.001953125 : f32
    %1 = vector.broadcast %cst : f32 to vector<8x1xf32>
    %2 = arith.mulf %0, %1 : vector<8x1xf32>
    %c0_1 = arith.constant 0 : index
    %c0_2 = arith.constant 0 : index
    %3 = vector.load %arg3[%c0_1, %c0_2] : memref<8x1xf32, #tpu.memory_space<vmem>>, vector<8x1xf32>
    %cst_3 = arith.constant 0.001953125 : f32
    %4 = vector.broadcast %cst_3 : f32 to vector<8x1xf32>
    %5 = arith.mulf %3, %4 : vector<8x1xf32>
    %6 = arith.mulf %2, %2 : vector<8x1xf32>
    %7 = arith.subf %5, %6 : vector<8x1xf32>
    %cst_4 = arith.constant 0.000000e+00 : f32
    %8 = vector.broadcast %cst_4 : f32 to vector<8x1xf32>
    %9 = arith.maximumf %7, %8 : vector<8x1xf32>
    %c0_5 = arith.constant 0 : index
    %c0_6 = arith.constant 0 : index
    %10 = vector.load %arg4[%c0_5, %c0_6] : memref<8x1xf32, #tpu.memory_space<vmem>>, vector<8x1xf32>
    %cst_7 = arith.constant 9.99999974E-6 : f32
    %11 = vector.broadcast %cst_7 : f32 to vector<8x1xf32>
    %12 = arith.addf %9, %11 : vector<8x1xf32>
    %13 = math.rsqrt %12 : vector<8x1xf32>
    %14 = arith.mulf %10, %13 : vector<8x1xf32>
    %c0_8 = arith.constant 0 : index
    %c0_9 = arith.constant 0 : index
    %15 = vector.load %arg5[%c0_8, %c0_9] : memref<8x1xf32, #tpu.memory_space<vmem>>, vector<8x1xf32>
    %16 = arith.mulf %2, %14 : vector<8x1xf32>
    %17 = arith.subf %15, %16 : vector<8x1xf32>
    %c0_10 = arith.constant 0 : index
    %c0_11 = arith.constant 0 : index
    %18 = vector.load %arg1[%c0_10, %c0_11] : memref<8x512xf32, #tpu.memory_space<vmem>>, vector<8x512xf32>
    %19 = vector.broadcast %14 : vector<8x1xf32> to vector<8x512xf32>
    %20 = arith.mulf %18, %19 : vector<8x512xf32>
    %21 = vector.broadcast %17 : vector<8x1xf32> to vector<8x512xf32>
    %22 = arith.addf %20, %21 : vector<8x512xf32>
    %cst_12 = arith.constant 0.000000e+00 : f32
    %23 = vector.broadcast %cst_12 : f32 to vector<8x512xf32>
    %24 = arith.maximumf %22, %23 : vector<8x512xf32>
    %c0_13 = arith.constant 0 : index
    %c0_14 = arith.constant 0 : index
    %25 = vector.load %arg6[%c0_13, %c0_14] : memref<8x512xf32, #tpu.memory_space<vmem>>, vector<8x512xf32>
    tpu.vector_store %arg6[%c0_13, %c0_14], %24 {strides = array<i32>} : memref<8x512xf32, #tpu.memory_space<vmem>>, vector<8x512xf32>,
    return
  }
  func.func @transform_0(%arg0: i32) -> (i32, i32) {
    %c1_i32 = arith.constant 1 : i32
    %0 = arith.addi %arg0, %c1_i32 : i32
    %c0_i32 = arith.constant 0 : i32
    %c0_i32_0 = arith.constant 0 : i32
    return %c0_i32, %0 : i32, i32
  }
  func.func @transform_1(%arg0: i32) -> (i32, i32) {
    %c0_i32 = arith.constant 0 : i32
    %c0_i32_0 = arith.constant 0 : i32
    %c0_i32_1 = arith.constant 0 : i32
    return %c0_i32, %c0_i32_0 : i32, i32
  }
  func.func @transform_2(%arg0: i32) -> (i32, i32) {
    %c0_i32 = arith.constant 0 : i32
    %c0_i32_0 = arith.constant 0 : i32
    %c0_i32_1 = arith.constant 0 : i32
    return %c0_i32, %c0_i32_0 : i32, i32
  }
  func.func @transform_3(%arg0: i32) -> (i32, i32) {
    %c0_i32 = arith.constant 0 : i32
    %c0_i32_0 = arith.constant 0 : i32
    %c0_i32_1 = arith.constant 0 : i32
    return %c0_i32, %c0_i32_0 : i32, i32
  }
  func.func @transform_4(%arg0: i32) -> (i32, i32) {
    %c0_i32 = arith.constant 0 : i32
    %c0_i32_0 = arith.constant 0 : i32
    %c0_i32_1 = arith.constant 0 : i32
    return %c0_i32, %c0_i32_0 : i32, i32
  }
  func.func @transform_5(%arg0: i32) -> (i32, i32) {
    %c0_i32 = arith.constant 0 : i32
    %c0_i32_0 = arith.constant 0 : i32
    return %c0_i32, %arg0 : i32, i32
  }
}

module attributes {stable_mosaic.version = 11 : i64} {
  func.func @kernel(%arg0: i32, %arg1: memref<8x128xf32, #tpu.memory_space<vmem>>, %arg2: memref<8x512xf32, #tpu.memory_space<vmem>>, %arg3: memref<8x128xf32, #tpu.memory_space<vmem>>, %arg4: memref<1x128xf32, #tpu.memory_space<vmem>>, %arg5: memref<1x512xf32, #tpu.memory_space<vmem>>, %arg6: memref<1x128xf32, #tpu.memory_space<vmem>>, %arg7: memref<8x1xf32, #tpu.memory_space<vmem>>, %arg8: memref<8x1xf32, #tpu.memory_space<vmem>>, %arg9: memref<8x1xf32, #tpu.memory_space<vmem>>, %arg10: memref<8x1xf32, #tpu.memory_space<vmem>>, %arg11: memref<9x8x8xf32, #tpu.memory_space<vmem>>, %arg12: memref<8x1xf32, #tpu.memory_space<vmem>>, %arg13: memref<8x512xf32, #tpu.memory_space<vmem>>, %arg14: memref<8x1xf32, #tpu.memory_space<vmem>>, %arg15: memref<8x1xf32, #tpu.memory_space<vmem>>) attributes {dimension_semantics = [#tpu.dimension_semantics<arbitrary>], iteration_bounds = array<i64: 2>, scalar_prefetch = 0 : i64, scratch_operands = 0 : i64, tpu.core_type = #tpu.core_type<tc>, window_params = [{transform_indices = @transform_0, window_bounds = array<i64: 8, 128>}, {transform_indices = @transform_1, window_bounds = array<i64: 8, 512>}, {transform_indices = @transform_2, window_bounds = array<i64: 8, 128>}, {transform_indices = @transform_3, window_bounds = array<i64: 1, 128>}, {transform_indices = @transform_4, window_bounds = array<i64: 1, 512>}, {transform_indices = @transform_5, window_bounds = array<i64: 1, 128>}, {pipeline_mode = #tpu.pipeline_mode<synchronous>, transform_indices = @transform_6, window_bounds = array<i64: 8, 1>}, {pipeline_mode = #tpu.pipeline_mode<synchronous>, transform_indices = @transform_7, window_bounds = array<i64: 8, 1>}, {pipeline_mode = #tpu.pipeline_mode<synchronous>, transform_indices = @transform_8, window_bounds = array<i64: 8, 1>}, {pipeline_mode = #tpu.pipeline_mode<synchronous>, transform_indices = @transform_9, window_bounds = array<i64: 8, 1>}, {pipeline_mode = #tpu.pipeline_mode<synchronous>, transform_indices = @transform_10, window_bounds = array<i64: 9, 8, 8>}, {pipeline_mode = #tpu.pipeline_mode<synchronous>, transform_indices = @transform_11, window_bounds = array<i64: 8, 1>}, {transform_indices = @transform_12, window_bounds = array<i64: 8, 512>}, {pipeline_mode = #tpu.pipeline_mode<synchronous>, transform_indices = @transform_13, window_bounds = array<i64: 8, 1>}, {pipeline_mode = #tpu.pipeline_mode<synchronous>, transform_indices = @transform_14, window_bounds = array<i64: 8, 1>}]} {
    %c0_i32 = arith.constant 0 : i32
    %0 = arith.cmpi eq, %arg0, %c0_i32 : i32
    %1 = arith.extui %0 : i1 to i32
    %c0_i32_0 = arith.constant 0 : i32
    %2 = arith.cmpi ne, %1, %c0_i32_0 : i32
    scf.if %2 {
      %cst_57 = arith.constant 0.000000e+00 : f32
      %110 = vector.broadcast %cst_57 : f32 to vector<8x1xf32>
      %c0_58 = arith.constant 0 : index
      %c0_59 = arith.constant 0 : index
      %111 = vector.load %arg14[%c0_58, %c0_59] : memref<8x1xf32, #tpu.memory_space<vmem>>, vector<8x1xf32>
      tpu.vector_store %arg14[%c0_58, %c0_59], %110 {strides = array<i32>} : memref<8x1xf32, #tpu.memory_space<vmem>>, vector<8x1xf32>,
      %cst_60 = arith.constant 0.000000e+00 : f32
      %112 = vector.broadcast %cst_60 : f32 to vector<8x1xf32>
      %c0_61 = arith.constant 0 : index
      %c0_62 = arith.constant 0 : index
      %113 = vector.load %arg15[%c0_61, %c0_62] : memref<8x1xf32, #tpu.memory_space<vmem>>, vector<8x1xf32>
      tpu.vector_store %arg15[%c0_61, %c0_62], %112 {strides = array<i32>} : memref<8x1xf32, #tpu.memory_space<vmem>>, vector<8x1xf32>,
    } else {
    }
    %c0 = arith.constant 0 : index
    %c0_1 = arith.constant 0 : index
    %3 = vector.load %arg7[%c0, %c0_1] : memref<8x1xf32, #tpu.memory_space<vmem>>, vector<8x1xf32>
    %cst = arith.constant 0.001953125 : f32
    %4 = vector.broadcast %cst : f32 to vector<8x1xf32>
    %5 = arith.mulf %3, %4 : vector<8x1xf32>
    %c0_2 = arith.constant 0 : index
    %c0_3 = arith.constant 0 : index
    %6 = vector.load %arg8[%c0_2, %c0_3] : memref<8x1xf32, #tpu.memory_space<vmem>>, vector<8x1xf32>
    %cst_4 = arith.constant 0.001953125 : f32
    %7 = vector.broadcast %cst_4 : f32 to vector<8x1xf32>
    %8 = arith.mulf %6, %7 : vector<8x1xf32>
    %9 = arith.mulf %5, %5 : vector<8x1xf32>
    %10 = arith.subf %8, %9 : vector<8x1xf32>
    %cst_5 = arith.constant 0.000000e+00 : f32
    %11 = vector.broadcast %cst_5 : f32 to vector<8x1xf32>
    %12 = arith.maximumf %10, %11 : vector<8x1xf32>
    %c0_6 = arith.constant 0 : index
    %c0_7 = arith.constant 0 : index
    %13 = vector.load %arg9[%c0_6, %c0_7] : memref<8x1xf32, #tpu.memory_space<vmem>>, vector<8x1xf32>
    %cst_8 = arith.constant 9.99999974E-6 : f32
    %14 = vector.broadcast %cst_8 : f32 to vector<8x1xf32>
    %15 = arith.addf %12, %14 : vector<8x1xf32>
    %16 = math.rsqrt %15 : vector<8x1xf32>
    %17 = arith.mulf %13, %16 : vector<8x1xf32>
    %c0_9 = arith.constant 0 : index
    %c0_10 = arith.constant 0 : index
    %18 = vector.load %arg10[%c0_9, %c0_10] : memref<8x1xf32, #tpu.memory_space<vmem>>, vector<8x1xf32>
    %19 = arith.mulf %5, %17 : vector<8x1xf32>
    %20 = arith.subf %18, %19 : vector<8x1xf32>
    %c0_11 = arith.constant 0 : index
    %c0_12 = arith.constant 0 : index
    %21 = vector.load %arg1[%c0_11, %c0_12] : memref<8x128xf32, #tpu.memory_space<vmem>>, vector<8x128xf32>
    %c0_13 = arith.constant 0 : index
    %c0_14 = arith.constant 0 : index
    %22 = vector.load %arg2[%c0_13, %c0_14] : memref<8x512xf32, #tpu.memory_space<vmem>>, vector<8x512xf32>
    %c0_15 = arith.constant 0 : index
    %c0_16 = arith.constant 0 : index
    %23 = vector.load %arg3[%c0_15, %c0_16] : memref<8x128xf32, #tpu.memory_space<vmem>>, vector<8x128xf32>
    %24 = tpu.concatenate %21, %22, %23 in 1 : vector<8x128xf32>, vector<8x512xf32>, vector<8x128xf32> -> vector<8x768xf32>
    %c0_17 = arith.constant 0 : index
    %c0_18 = arith.constant 0 : index
    %25 = vector.load %arg4[%c0_17, %c0_18] : memref<1x128xf32, #tpu.memory_space<vmem>>, vector<1x128xf32>
    %c0_19 = arith.constant 0 : index
    %c0_20 = arith.constant 0 : index
    %26 = vector.load %arg5[%c0_19, %c0_20] : memref<1x512xf32, #tpu.memory_space<vmem>>, vector<1x512xf32>
    %c0_21 = arith.constant 0 : index
    %c0_22 = arith.constant 0 : index
    %27 = vector.load %arg6[%c0_21, %c0_22] : memref<1x128xf32, #tpu.memory_space<vmem>>, vector<1x128xf32>
    %28 = tpu.concatenate %25, %26, %27 in 1 : vector<1x128xf32>, vector<1x512xf32>, vector<1x128xf32> -> vector<1x768xf32>
    %29 = vector.broadcast %17 : vector<8x1xf32> to vector<8x768xf32>
    %30 = arith.mulf %24, %29 : vector<8x768xf32>
    %31 = vector.broadcast %20 : vector<8x1xf32> to vector<8x768xf32>
    %32 = arith.addf %30, %31 : vector<8x768xf32>
    %cst_23 = arith.constant 0.000000e+00 : f32
    %33 = vector.broadcast %cst_23 : f32 to vector<8x768xf32>
    %34 = arith.maximumf %32, %33 : vector<8x768xf32>
    %cst_24 = arith.constant 5.000000e-01 : f32
    %35 = vector.broadcast %cst_24 : f32 to vector<1x768xf32>
    %36 = arith.cmpf ogt, %28, %35 : vector<1x768xf32>
    %cst_25 = arith.constant 0.000000e+00 : f32
    %37 = vector.shape_cast %36 : vector<1x768xi1> to vector<1x768xi1>
    %38 = vector.broadcast %37 : vector<1x768xi1> to vector<8x768xi1>
    %39 = vector.broadcast %cst_25 : f32 to vector<8x768xf32>
    %40 = arith.select %38, %34, %39 : vector<8x768xi1>, vector<8x768xf32>
    %c0_26 = arith.constant 0 : index
    %c0_27 = arith.constant 0 : index
    %c0_28 = arith.constant 0 : index
    %41 = vector.load %arg11[%c0_26, %c0_27, %c0_28] : memref<9x8x8xf32, #tpu.memory_space<vmem>>, vector<9x8x8xf32>
    %cst_29 = arith.constant 0.000000e+00 : f32
    %42 = vector.broadcast %cst_29 : f32 to vector<8x512xf32>
    %43 = vector.extract_strided_slice %40 {offsets = [0, 109], sizes = [8, 512], strides = [1, 1]} : vector<8x768xf32> to vector<8x512xf32>
    %44 = vector.extract_strided_slice %41 {offsets = [0, 0, 0], sizes = [1, 8, 8], strides = [1, 1, 1]} : vector<9x8x8xf32> to vector<1x8x8xf32>
    %45 = vector.shape_cast %44 : vector<1x8x8xf32> to vector<8x8xf32>
    %cst_30 = arith.constant dense<0.000000e+00> : vector<8x512xf32>
    %46 = tpu.matmul %45, %43, %cst_30 {dimension_numbers = #tpu.dot_dimension_numbers<[1], [0], [0], [1], [0, 0, 1, 1], [], []>} : vector<8x8xf32>, vector<8x512xf32>, vector<8x512xf32> -> vector<8x512xf32>
    %47 = arith.addf %42, %46 : vector<8x512xf32>
    %48 = vector.extract_strided_slice %40 {offsets = [0, 110], sizes = [8, 512], strides = [1, 1]} : vector<8x768xf32> to vector<8x512xf32>
    %49 = vector.extract_strided_slice %41 {offsets = [1, 0, 0], sizes = [1, 8, 8], strides = [1, 1, 1]} : vector<9x8x8xf32> to vector<1x8x8xf32>
    %50 = vector.shape_cast %49 : vector<1x8x8xf32> to vector<8x8xf32>
    %cst_31 = arith.constant dense<0.000000e+00> : vector<8x512xf32>
    %51 = tpu.matmul %50, %48, %cst_31 {dimension_numbers = #tpu.dot_dimension_numbers<[1], [0], [0], [1], [0, 0, 1, 1], [], []>} : vector<8x8xf32>, vector<8x512xf32>, vector<8x512xf32> -> vector<8x512xf32>
    %52 = arith.addf %47, %51 : vector<8x512xf32>
    %53 = vector.extract_strided_slice %40 {offsets = [0, 111], sizes = [8, 512], strides = [1, 1]} : vector<8x768xf32> to vector<8x512xf32>
    %54 = vector.extract_strided_slice %41 {offsets = [2, 0, 0], sizes = [1, 8, 8], strides = [1, 1, 1]} : vector<9x8x8xf32> to vector<1x8x8xf32>
    %55 = vector.shape_cast %54 : vector<1x8x8xf32> to vector<8x8xf32>
    %cst_32 = arith.constant dense<0.000000e+00> : vector<8x512xf32>
    %56 = tpu.matmul %55, %53, %cst_32 {dimension_numbers = #tpu.dot_dimension_numbers<[1], [0], [0], [1], [0, 0, 1, 1], [], []>} : vector<8x8xf32>, vector<8x512xf32>, vector<8x512xf32> -> vector<8x512xf32>
    %57 = arith.addf %52, %56 : vector<8x512xf32>
    %58 = vector.extract_strided_slice %40 {offsets = [0, 127], sizes = [8, 512], strides = [1, 1]} : vector<8x768xf32> to vector<8x512xf32>
    %59 = vector.extract_strided_slice %41 {offsets = [3, 0, 0], sizes = [1, 8, 8], strides = [1, 1, 1]} : vector<9x8x8xf32> to vector<1x8x8xf32>
    %60 = vector.shape_cast %59 : vector<1x8x8xf32> to vector<8x8xf32>
    %cst_33 = arith.constant dense<0.000000e+00> : vector<8x512xf32>
    %61 = tpu.matmul %60, %58, %cst_33 {dimension_numbers = #tpu.dot_dimension_numbers<[1], [0], [0], [1], [0, 0, 1, 1], [], []>} : vector<8x8xf32>, vector<8x512xf32>, vector<8x512xf32> -> vector<8x512xf32>
    %62 = arith.addf %57, %61 : vector<8x512xf32>
    %63 = vector.extract_strided_slice %40 {offsets = [0, 128], sizes = [8, 512], strides = [1, 1]} : vector<8x768xf32> to vector<8x512xf32>
    %64 = vector.extract_strided_slice %41 {offsets = [4, 0, 0], sizes = [1, 8, 8], strides = [1, 1, 1]} : vector<9x8x8xf32> to vector<1x8x8xf32>
    %65 = vector.shape_cast %64 : vector<1x8x8xf32> to vector<8x8xf32>
    %cst_34 = arith.constant dense<0.000000e+00> : vector<8x512xf32>
    %66 = tpu.matmul %65, %63, %cst_34 {dimension_numbers = #tpu.dot_dimension_numbers<[1], [0], [0], [1], [0, 0, 1, 1], [], []>} : vector<8x8xf32>, vector<8x512xf32>, vector<8x512xf32> -> vector<8x512xf32>
    %67 = arith.addf %62, %66 : vector<8x512xf32>
    %68 = vector.extract_strided_slice %40 {offsets = [0, 129], sizes = [8, 512], strides = [1, 1]} : vector<8x768xf32> to vector<8x512xf32>
    %69 = vector.extract_strided_slice %41 {offsets = [5, 0, 0], sizes = [1, 8, 8], strides = [1, 1, 1]} : vector<9x8x8xf32> to vector<1x8x8xf32>
    %70 = vector.shape_cast %69 : vector<1x8x8xf32> to vector<8x8xf32>
    %cst_35 = arith.constant dense<0.000000e+00> : vector<8x512xf32>
    %71 = tpu.matmul %70, %68, %cst_35 {dimension_numbers = #tpu.dot_dimension_numbers<[1], [0], [0], [1], [0, 0, 1, 1], [], []>} : vector<8x8xf32>, vector<8x512xf32>, vector<8x512xf32> -> vector<8x512xf32>
    %72 = arith.addf %67, %71 : vector<8x512xf32>
    %73 = vector.extract_strided_slice %40 {offsets = [0, 145], sizes = [8, 512], strides = [1, 1]} : vector<8x768xf32> to vector<8x512xf32>
    %74 = vector.extract_strided_slice %41 {offsets = [6, 0, 0], sizes = [1, 8, 8], strides = [1, 1, 1]} : vector<9x8x8xf32> to vector<1x8x8xf32>
    %75 = vector.shape_cast %74 : vector<1x8x8xf32> to vector<8x8xf32>
    %cst_36 = arith.constant dense<0.000000e+00> : vector<8x512xf32>
    %76 = tpu.matmul %75, %73, %cst_36 {dimension_numbers = #tpu.dot_dimension_numbers<[1], [0], [0], [1], [0, 0, 1, 1], [], []>} : vector<8x8xf32>, vector<8x512xf32>, vector<8x512xf32> -> vector<8x512xf32>
    %77 = arith.addf %72, %76 : vector<8x512xf32>
    %78 = vector.extract_strided_slice %40 {offsets = [0, 146], sizes = [8, 512], strides = [1, 1]} : vector<8x768xf32> to vector<8x512xf32>
    %79 = vector.extract_strided_slice %41 {offsets = [7, 0, 0], sizes = [1, 8, 8], strides = [1, 1, 1]} : vector<9x8x8xf32> to vector<1x8x8xf32>
    %80 = vector.shape_cast %79 : vector<1x8x8xf32> to vector<8x8xf32>
    %cst_37 = arith.constant dense<0.000000e+00> : vector<8x512xf32>
    %81 = tpu.matmul %80, %78, %cst_37 {dimension_numbers = #tpu.dot_dimension_numbers<[1], [0], [0], [1], [0, 0, 1, 1], [], []>} : vector<8x8xf32>, vector<8x512xf32>, vector<8x512xf32> -> vector<8x512xf32>
    %82 = arith.addf %77, %81 : vector<8x512xf32>
    %83 = vector.extract_strided_slice %40 {offsets = [0, 147], sizes = [8, 512], strides = [1, 1]} : vector<8x768xf32> to vector<8x512xf32>
    %84 = vector.extract_strided_slice %41 {offsets = [8, 0, 0], sizes = [1, 8, 8], strides = [1, 1, 1]} : vector<9x8x8xf32> to vector<1x8x8xf32>
    %85 = vector.shape_cast %84 : vector<1x8x8xf32> to vector<8x8xf32>
    %cst_38 = arith.constant dense<0.000000e+00> : vector<8x512xf32>
    %86 = tpu.matmul %85, %83, %cst_38 {dimension_numbers = #tpu.dot_dimension_numbers<[1], [0], [0], [1], [0, 0, 1, 1], [], []>} : vector<8x8xf32>, vector<8x512xf32>, vector<8x512xf32> -> vector<8x512xf32>
    %87 = arith.addf %82, %86 : vector<8x512xf32>
    %c0_39 = arith.constant 0 : index
    %c0_40 = arith.constant 0 : index
    %88 = vector.load %arg12[%c0_39, %c0_40] : memref<8x1xf32, #tpu.memory_space<vmem>>, vector<8x1xf32>
    %89 = vector.broadcast %88 : vector<8x1xf32> to vector<8x512xf32>
    %90 = arith.addf %87, %89 : vector<8x512xf32>
    %c0_41 = arith.constant 0 : index
    %c0_42 = arith.constant 0 : index
    %91 = vector.load %arg13[%c0_41, %c0_42] : memref<8x512xf32, #tpu.memory_space<vmem>>, vector<8x512xf32>
    tpu.vector_store %arg13[%c0_41, %c0_42], %90 {strides = array<i32>} : memref<8x512xf32, #tpu.memory_space<vmem>>, vector<8x512xf32>,
    %c0_43 = arith.constant 0 : index
    %c0_44 = arith.constant 0 : index
    %92 = vector.load %arg5[%c0_43, %c0_44] : memref<1x512xf32, #tpu.memory_space<vmem>>, vector<1x512xf32>
    %cst_45 = arith.constant 5.000000e-01 : f32
    %93 = vector.broadcast %cst_45 : f32 to vector<1x512xf32>
    %94 = arith.cmpf ogt, %92, %93 : vector<1x512xf32>
    %cst_46 = arith.constant 0.000000e+00 : f32
    %95 = vector.shape_cast %94 : vector<1x512xi1> to vector<1x512xi1>
    %96 = vector.broadcast %95 : vector<1x512xi1> to vector<8x512xi1>
    %97 = vector.broadcast %cst_46 : f32 to vector<8x512xf32>
    %98 = arith.select %96, %90, %97 : vector<8x512xi1>, vector<8x512xf32>
    %c0_47 = arith.constant 0 : index
    %c0_48 = arith.constant 0 : index
    %99 = vector.load %arg14[%c0_47, %c0_48] : memref<8x1xf32, #tpu.memory_space<vmem>>, vector<8x1xf32>
    %cst_49 = arith.constant dense<0.000000e+00> : vector<8xf32>
    %100 = vector.multi_reduction <add>, %98, %cst_49 [1] : vector<8x512xf32> to vector<8xf32>
    %101 = vector.shape_cast %100 : vector<8xf32> to vector<8x1xf32>
    %102 = arith.addf %99, %101 : vector<8x1xf32>
    %c0_50 = arith.constant 0 : index
    %c0_51 = arith.constant 0 : index
    %103 = vector.load %arg14[%c0_50, %c0_51] : memref<8x1xf32, #tpu.memory_space<vmem>>, vector<8x1xf32>
    tpu.vector_store %arg14[%c0_50, %c0_51], %102 {strides = array<i32>} : memref<8x1xf32, #tpu.memory_space<vmem>>, vector<8x1xf32>,
    %c0_52 = arith.constant 0 : index
    %c0_53 = arith.constant 0 : index
    %104 = vector.load %arg15[%c0_52, %c0_53] : memref<8x1xf32, #tpu.memory_space<vmem>>, vector<8x1xf32>
    %105 = arith.mulf %98, %98 : vector<8x512xf32>
    %cst_54 = arith.constant dense<0.000000e+00> : vector<8xf32>
    %106 = vector.multi_reduction <add>, %105, %cst_54 [1] : vector<8x512xf32> to vector<8xf32>
    %107 = vector.shape_cast %106 : vector<8xf32> to vector<8x1xf32>
    %108 = arith.addf %104, %107 : vector<8x1xf32>
    %c0_55 = arith.constant 0 : index
    %c0_56 = arith.constant 0 : index
    %109 = vector.load %arg15[%c0_55, %c0_56] : memref<8x1xf32, #tpu.memory_space<vmem>>, vector<8x1xf32>
    tpu.vector_store %arg15[%c0_55, %c0_56], %108 {strides = array<i32>} : memref<8x1xf32, #tpu.memory_space<vmem>>, vector<8x1xf32>,
    return
  }
  func.func @transform_0(%arg0: i32) -> (i32, i32) {
    %c1_i32 = arith.constant 1 : i32
    %0 = arith.addi %arg0, %c1_i32 : i32
    %c4_i32 = arith.constant 4 : i32
    %1 = arith.muli %0, %c4_i32 : i32
    %c1_i32_0 = arith.constant 1 : i32
    %2 = arith.subi %1, %c1_i32_0 : i32
    %c0_i32 = arith.constant 0 : i32
    %c0_i32_1 = arith.constant 0 : i32
    return %c0_i32, %2 : i32, i32
  }
  func.func @transform_1(%arg0: i32) -> (i32, i32) {
    %c1_i32 = arith.constant 1 : i32
    %0 = arith.addi %arg0, %c1_i32 : i32
    %c0_i32 = arith.constant 0 : i32
    %c0_i32_0 = arith.constant 0 : i32
    return %c0_i32, %0 : i32, i32
  }
  func.func @transform_2(%arg0: i32) -> (i32, i32) {
    %c1_i32 = arith.constant 1 : i32
    %0 = arith.addi %arg0, %c1_i32 : i32
    %c1_i32_0 = arith.constant 1 : i32
    %1 = arith.addi %0, %c1_i32_0 : i32
    %c4_i32 = arith.constant 4 : i32
    %2 = arith.muli %1, %c4_i32 : i32
    %c0_i32 = arith.constant 0 : i32
    %c0_i32_1 = arith.constant 0 : i32
    return %c0_i32, %2 : i32, i32
  }
  func.func @transform_3(%arg0: i32) -> (i32, i32) {
    %c1_i32 = arith.constant 1 : i32
    %0 = arith.addi %arg0, %c1_i32 : i32
    %c4_i32 = arith.constant 4 : i32
    %1 = arith.muli %0, %c4_i32 : i32
    %c1_i32_0 = arith.constant 1 : i32
    %2 = arith.subi %1, %c1_i32_0 : i32
    %c0_i32 = arith.constant 0 : i32
    %c0_i32_1 = arith.constant 0 : i32
    return %c0_i32, %2 : i32, i32
  }
  func.func @transform_4(%arg0: i32) -> (i32, i32) {
    %c1_i32 = arith.constant 1 : i32
    %0 = arith.addi %arg0, %c1_i32 : i32
    %c0_i32 = arith.constant 0 : i32
    %c0_i32_0 = arith.constant 0 : i32
    return %c0_i32, %0 : i32, i32
  }
  func.func @transform_5(%arg0: i32) -> (i32, i32) {
    %c1_i32 = arith.constant 1 : i32
    %0 = arith.addi %arg0, %c1_i32 : i32
    %c1_i32_0 = arith.constant 1 : i32
    %1 = arith.addi %0, %c1_i32_0 : i32
    %c4_i32 = arith.constant 4 : i32
    %2 = arith.muli %1, %c4_i32 : i32
    %c0_i32 = arith.constant 0 : i32
    %c0_i32_1 = arith.constant 0 : i32
    return %c0_i32, %2 : i32, i32
  }
  func.func @transform_6(%arg0: i32) -> (i32, i32) {
    %c0_i32 = arith.constant 0 : i32
    %c0_i32_0 = arith.constant 0 : i32
    %c0_i32_1 = arith.constant 0 : i32
    return %c0_i32, %c0_i32_0 : i32, i32
  }
  func.func @transform_7(%arg0: i32) -> (i32, i32) {
    %c0_i32 = arith.constant 0 : i32
    %c0_i32_0 = arith.constant 0 : i32
    %c0_i32_1 = arith.constant 0 : i32
    return %c0_i32, %c0_i32_0 : i32, i32
  }
  func.func @transform_8(%arg0: i32) -> (i32, i32) {
    %c0_i32 = arith.constant 0 : i32
    %c0_i32_0 = arith.constant 0 : i32
    %c0_i32_1 = arith.constant 0 : i32
    return %c0_i32, %c0_i32_0 : i32, i32
  }
  func.func @transform_9(%arg0: i32) -> (i32, i32) {
    %c0_i32 = arith.constant 0 : i32
    %c0_i32_0 = arith.constant 0 : i32
    %c0_i32_1 = arith.constant 0 : i32
    return %c0_i32, %c0_i32_0 : i32, i32
  }
  func.func @transform_10(%arg0: i32) -> (i32, i32, i32) {
    %c0_i32 = arith.constant 0 : i32
    %c0_i32_0 = arith.constant 0 : i32
    %c0_i32_1 = arith.constant 0 : i32
    %c0_i32_2 = arith.constant 0 : i32
    return %c0_i32, %c0_i32_0, %c0_i32_1 : i32, i32, i32
  }
  func.func @transform_11(%arg0: i32) -> (i32, i32) {
    %c0_i32 = arith.constant 0 : i32
    %c0_i32_0 = arith.constant 0 : i32
    %c0_i32_1 = arith.constant 0 : i32
    return %c0_i32, %c0_i32_0 : i32, i32
  }
  func.func @transform_12(%arg0: i32) -> (i32, i32) {
    %c1_i32 = arith.constant 1 : i32
    %0 = arith.addi %arg0, %c1_i32 : i32
    %c0_i32 = arith.constant 0 : i32
    %c0_i32_0 = arith.constant 0 : i32
    return %c0_i32, %0 : i32, i32
  }
  func.func @transform_13(%arg0: i32) -> (i32, i32) {
    %c0_i32 = arith.constant 0 : i32
    %c0_i32_0 = arith.constant 0 : i32
    %c0_i32_1 = arith.constant 0 : i32
    return %c0_i32, %c0_i32_0 : i32, i32
  }
  func.func @transform_14(%arg0: i32) -> (i32, i32) {
    %c0_i32 = arith.constant 0 : i32
    %c0_i32_0 = arith.constant 0 : i32
    %c0_i32_1 = arith.constant 0 : i32
    return %c0_i32, %c0_i32_0 : i32, i32
  }
}

</mosaic_0001>

<bundles_post_ra>
// kernel: double_conv_forward.5
= control target key start
LH: loop header
LB: loop body
LE: loop exit
PB: predicated region body
PF: predicated region fallthrough
CT: control target
= control target key end

     0   :  { %s399_s18 = smov 0   ;;  %s428_s0 = inlined_call_operand.vmem [shape: f32[8,2048], index: 0, kind: input, shape index: {}]   ;;  %s429_s1 = inlined_call_operand.vmem [shape: f32[8,1], index: 1, kind: input, shape index: {}]   ;;  %s430_s2 = inlined_call_operand.vmem [shape: f32[8,1], index: 2, kind: input, shape index: {}]   ;;  %s431_s3 = inlined_call_operand.vmem [shape: f32[8,1], index: 3, kind: input, shape index: {}]   ;;  %s432_s4 = inlined_call_operand.vmem [shape: f32[8,1], index: 4, kind: input, shape index: {}]   ;;  %s433_s5 = inlined_call_operand.vmem [shape: f32[8,1024], index: 5, kind: output, shape index: {}]  }
   0x1 LB: > { %s335_s19 = sadd.s32 4294967295, %s366_s18   ;;  %p339_p0 = scmp.ge.s32.totalorder %s366_s18, 1  ;;  %s366_s18 = sphi %s399_s18, %s15_s18  }
   0x2   : > { %p192_p1 = scmp.lt.s32.totalorder %s366_s18, 3 }
   0x4   : > { %p193_p2 = pnand %p339_p0, %p192_p1 }
   0x5   : > { %s346_s28 = sshll.u32 (!%p193_p2), %s335_s19, 2 }
   0x6   : > { %196 = sbr.rel (%p193_p2) target bundleno = 172 (0xac), region = 40  ;;  %s347_s29 = sadd.s32 (!%p193_p2), 4, %s346_s28 }
   0x7   : > { %p223_p3 = scmp.lt.s32.totalorder (!%p193_p2), %s347_s29, 15  ;;  %p230_p4 = scmp.lt.s32.totalorder (!%p193_p2), %s346_s28, 7 }
   0xb   : > { %v235_v0 = vld [vmem:[%s429_s1] sm:$0xff]  ;;  %v368_v2 = vmov 0   ;;  %s435_s29 = smov (!%p223_p3, %s347_s29), 15  ;;  %s437_s28 = smov (!%p230_p4, %s346_s28), 7 }
   0xc   : > { %v237_v1 = vld [vmem:[%s430_s2] sm:$0xff]  ;;  %357 = vset.pattern.permute.xlu0 %v368_v2  ;;  %v236_v3 = vmul.f32 0.001953125, %v235_v0  ;;  %s341_s30 = sshll.u32 %s435_s29, 3  ;;  %s343_s9 = sshll.u32 %s437_s28, 3 }
   0xd   : > { %v238_v4 = vmul.f32 0.001953125, %v237_v1  ;;  %v242_v9 = vld [vmem:[%s431_s3] sm:$0xff]  ;;  %s226_s8 = scalar_lea.vmem %s428_s0, %s341_s30  ;;  %s233_s12 = scalar_lea.vmem %s433_s5, %s343_s9 }
   0xe   : > { %v239_v5 = vmul.f32 %v236_v3, %v236_v3  ;;  %v246_v12 = vld [vmem:[%s432_s4] sm:$0xff]  ;;  %v250_v17 = vld [vmem:[%s226_s8 + $0x8] sm:$0xff]  ;;  %v251_v18 = vld [vmem:[%s226_s8 + $0x10] sm:$0xff] }
   0xf   : > { %v249_v16 = vld [vmem:[%s226_s8] sm:$0xff]  ;;  %v252_v19 = vld [vmem:[%s226_s8 + $0x18] sm:$0xff] }
  0x10   : > { %v240_v6 = vsub.f32 %v238_v4, %v239_v5 }
  0x12   : > { %v241_v7 = vmax.f32 %v240_v6, 0.0 }
  0x14   : > { %v243_v8 = vadd.f32 1e-05, %v241_v7 }
  0x16   : > { %358 = vrsqrt.f32 %v243_v8 }
  0x23   : > { %v359_v10 = vpop.eup %358 }
  0x24   : > { %v245_v11 = vmul.f32 %v359_v10, %v242_v9 }
  0x26   : > { %255 = vperm.xlu0 %357, %v245_v11   ;;  %v247_v13 = vmul.f32 %v245_v11, %v236_v3 }
  0x28   : > { %v248_v14 = vsub.f32 %v246_v12, %v247_v13 }
  0x2a   : > { %264 = vperm.xlu0 %357, %v248_v14  }
  0xa1   : > { %v256_v15 = vpop.permute.xlu0 %255 }
  0xa2   : > { %v258_v20 = vmul.f32 %v256_v15, %v249_v16  ;;  %v259_v21 = vmul.f32 %v256_v15, %v250_v17  ;;  %v260_v22 = vmul.f32 %v256_v15, %v251_v18  ;;  %v261_v24 = vmul.f32 %v256_v15, %v252_v19 }
  0xa5   : > { %v265_v23 = vpop.permute.xlu0 %264 }
  0xa6   : > { %v267_v25 = vadd.f32 %v265_v23, %v258_v20  ;;  %v268_v26 = vadd.f32 %v265_v23, %v259_v21  ;;  %v269_v27 = vadd.f32 %v265_v23, %v260_v22  ;;  %v270_v28 = vadd.f32 %v265_v23, %v261_v24 }
  0xa8   : > { %v271_v29 = vmax.f32 %v267_v25, 0.0  ;;  %v272_v30 = vmax.f32 %v268_v26, 0.0  ;;  %v273_v31 = vmax.f32 %v269_v27, 0.0  ;;  %v274_v32 = vmax.f32 %v270_v28, 0.0 }
  0xaa   : > { %275 = vst [vmem:[%s233_s12] sm:$0xff] %v271_v29  ;;  %276 = vst [vmem:[%s233_s12 + $0x8] sm:$0xff] %v272_v30 }
  0xab   : > { %277 = vst [vmem:[%s233_s12 + $0x10] sm:$0xff] %v273_v31  ;;  %278 = vst [vmem:[%s233_s12 + $0x18] sm:$0xff] %v274_v32 }
  0xac PF: > { %s15_s18 = sadd.s32 1, %s366_s18  }
  0xad   : > { %p12_p5 = scmp.ge.s32.totalorder %s15_s18, 4  }
  0xaf   :  { %14 = sbr.rel (!%p12_p5) target bundleno = 1 (0x1), region = 70 }

// kernel: double_conv_forward.3
= control target key start
LH: loop header
LB: loop body
LE: loop exit
PB: predicated region body
PF: predicated region fallthrough
CT: control target
= control target key end

     0   :  { %s2311_s27 = smov 0   ;;  %s2548_s0 = inlined_call_operand.vmem [shape: f32[4,2048], index: 0, kind: input, shape index: {}, may-alias: {0,1,2}]   ;;  %s2549_s1 = inlined_call_operand.vmem [shape: f32[4,2048], index: 1, kind: input, shape index: {}, may-alias: {0,1,2}]   ;;  %s2550_s2 = inlined_call_operand.vmem [shape: f32[4,2048], index: 2, kind: input, shape index: {}, may-alias: {0,1,2}]   ;;  %s2551_s3 = inlined_call_operand.vmem [shape: f32[1,2048], index: 3, kind: input, shape index: {}]   ;;  %s2552_s4 = inlined_call_operand.vmem [shape: f32[9,8,4], index: 4, kind: input, shape index: {}]   ;;  %s2553_s5 = inlined_call_operand.vmem [shape: f32[8,1], index: 5, kind: input, shape index: {}]   ;;  %s2554_s6 = inlined_call_operand.vmem [shape: f32[8,2048], index: 6, kind: output, shape index: {0}]   ;;  %s2555_s7 = inlined_call_operand.vmem [shape: f32[8,1], index: 7, kind: output, shape index: {1}]   ;;  %s2556_s8 = inlined_call_operand.vmem [shape: f32[8,1], index: 8, kind: output, shape index: {2}]  }
   0x1 LB: > { %s2129_s28 = sadd.s32 4294967295, %s2253_s27   ;;  %p2139_p0 = scmp.ge.s32.totalorder %s2253_s27, 1  ;;  %s2253_s27 = sphi %s2311_s27, %s19_s27  }
   0x2   : > { %p316_p1 = scmp.lt.s32.totalorder %s2253_s27, 3 }
   0x4   : > { %p317_p2 = pnand %p2139_p0, %p316_p1 }
   0x5   : > { %s2215_s29 = sshll.u32 (!%p317_p2), %s2129_s28, 2  ;;  %p2150_p6 = scmp.ne.s32.totalorder (!%p317_p2), %s2129_s28, 0 }
   0x6   : > { %320 = sbr.rel (%p317_p2) target bundleno = 564 (0x234), region = 44  ;;  %s2216_s30 = sadd.s32 (!%p317_p2), 4, %s2215_s29 }
   0x7   : > { %s2220_s9 = sadd.s32 (!%p317_p2), 8, %s2215_s29  ;;  %s2141_s10 = sadd.s32 (!%p317_p2), 4294967295, %s2216_s30 }
   0x8   : > { %p382_p3 = scmp.lt.s32.totalorder (!%p317_p2), %s2216_s30, 15  ;;  %p373_p4 = scmp.lt.s32.totalorder (!%p317_p2), %s2141_s10, 15 }
   0x9   : > { %p390_p5 = scmp.lt.s32.totalorder (!%p317_p2), %s2220_s9, 15 }
   0xb   : > { %s2558_s30 = smov (!%p382_p3, %s2216_s30), 15  ;;  %s2560_s10 = smov (!%p373_p4, %s2141_s10), 15 }
   0xc   : > { %s2144_s11 = sshll.u32 %s2558_s30, 2  ;;  %s400_s14 = scalar_lea.vmem %s2551_s3, %s2558_s30 }
   0xd   : > { %s2142_s15 = sshll.u32 %s2560_s10, 2  ;;  %s385_s18 = scalar_lea.vmem %s2549_s1, %s2144_s11 }
   0xe   : > { %s376_s21 = scalar_lea.vmem %s2548_s0, %s2142_s15  ;;  %s2149_s22 = sshll.u32 %s2558_s30, 3 }
   0xf   : > { %s2562_s9 = smov (!%p390_p5, %s2220_s9), 15  ;;  %s2336_s25 = scalar_lea.vmem %s2554_s6, %s2149_s22 }
  0x10   : > { %s2146_s26 = sshll.u32 %s2562_s9, 2  ;;  %414 = sbr.rel (%p2150_p6) target bundleno = 23 (0x17), region = 48 }
  0x11   : > { %s2341_s10 = scalar_lea.vmem %s2550_s2, %s2146_s26 }
  0x15   : > { %vm415_vm0 = vcmask 7168   ;;  %v2255_v0 = vmov 0.0  }
  0x16   : > { %416 = vst.msk [vmem:[%s2555_s7] sm:$0xff] %vm415_vm0, %v2255_v0  ;;  %417 = vst.msk [vmem:[%s2556_s8] sm:$0xff] %vm415_vm0, %v2255_v0 }
  0x17 PF: > { %v2349_v1 = vld [vmem:[%s385_s18] sm:$0xff]  ;;  %s2256_s9 = smov 18   ;;  %v2356_v4 = vld [vmem:[%s385_s18 + $0x8] sm:$0xff]  ;;  %v2257_v5 = vmov 0.0   ;;  %s2258_s28 = smov 19   ;;  %v2264_v8 = vmov 0  }
  0x18   : > { %v418_v2 = vld [vmem:[%s376_s21] sm:$0xf]  ;;  %438 = vrot.lane.b32.xlu0 %v2349_v1, %s2256_s9  ;;  %v2354_v3 = vcombine.high %v2349_v1, %v2349_v1  ;;  %528 = vmatprep.mubr.f32.mxu0 %v2257_v5  ;;  %v2364_v6 = vcombine.high %v2356_v4, %v2356_v4  ;;  %s2259_s17 = smov 17   ;;  %s2260_s18 = smov 1   ;;  %vm446_vm1 = vcmask 146432   ;;  %vm455_vm2 = vcmask 1043456  }
  0x19   : > { %436 = vrot.lane.b32.xlu1 %v418_v2, %s2256_s9  ;;  %599 = vmatprep.mubr.f32.mxu1 %v2257_v5  ;;  %s2261_s19 = smov 127   ;;  %v421_v7 = vld [vmem:[%s2341_s10] sm:$0xf]  ;;  %s2262_s20 = smov 111   ;;  %v427_v15 = vld [vmem:[%s2552_s4 + $0x8] sm:$0xff]  ;;  %vm451_vm3 = vcmask 31744  }
  0x1a   : > { %s2263_s21 = smov 110   ;;  %2244 = vset.pattern.permute.xlu0 %v2264_v8  ;;  %s2265_s22 = smov 109   ;;  %v1964_v9 = vld [vmem:[%s2553_s5] sm:$0xff]  ;;  %vm616_vm4 = vcmask 154624   ;;  %vm784_vm5 = vcmask 138240   ;;  %v428_v35 = vld [vmem:[%s2552_s4 + $0x10] sm:$0xff] }
  0x1b   : > { %v426_v25 = vld [vmem:[%s2552_s4] sm:$0xff]  ;;  %vm956_vm6 = vcmask 7168   ;;  %v429_v45 = vld [vmem:[%s2552_s4 + $0x18] sm:$0xff]  ;;  %vm1286_vm7 = vcmask 1039360   ;;  %v431_v56 = vld [vmem:[%s2552_s4 + $0x28] sm:$0xff]  ;;  %vm1458_vm8 = vcmask 908288  }
  0x1c   : > { %440 = vrot.lane.b32.xlu0 %v2354_v3, %s2256_s9  ;;  %v430_v50 = vld [vmem:[%s2552_s4 + $0x20] sm:$0xff]  ;;  %vm1630_vm9 = vcmask 900096   ;;  %vm1802_vm10 = vcmask 891904  }
  0x1d   : > { %442 = vrot.lane.b32.xlu1 %v2356_v4, %s2256_s9 }
  0x20   : > { %444 = vrot.lane.b32.xlu0 %v2364_v6, %s2256_s9 }
  0x21   : > { %608 = vrot.lane.b32.xlu1 %v2349_v1, %s2258_s28 }
  0x24   : > { %610 = vrot.lane.b32.xlu0 %v2354_v3, %s2258_s28 }
  0x25   : > { %606 = vrot.lane.b32.xlu1 %v418_v2, %s2258_s28 }
  0x28   : > { %612 = vrot.lane.b32.xlu0 %v2356_v4, %s2258_s28 }
  0x29   : > { %614 = vrot.lane.b32.xlu1 %v2364_v6, %s2258_s28 }
  0x2c   : > { %776 = vrot.lane.b32.xlu0 %v2349_v1, %s2259_s17 }
  0x2d   : > { %778 = vrot.lane.b32.xlu1 %v2354_v3, %s2259_s17 }
  0x30   : > { %774 = vrot.lane.b32.xlu0 %v418_v2, %s2259_s17 }
  0x31   : > { %780 = vrot.lane.b32.xlu1 %v2356_v4, %s2259_s17 }
  0x34   : > { %782 = vrot.lane.b32.xlu0 %v2364_v6, %s2259_s17 }
  0x35   : > { %948 = vrot.lane.b32.xlu1 %v2349_v1, %s2260_s18 }
  0x38   : > { %950 = vrot.lane.b32.xlu0 %v2354_v3, %s2260_s18 }
  0x39   : > { %946 = vrot.lane.b32.xlu1 %v418_v2, %s2260_s18  ;;  %v432_v2 = vld [vmem:[%s2552_s4 + $0x30] sm:$0xff] }
  0x3c   : > { %952 = vrot.lane.b32.xlu0 %v2356_v4, %s2260_s18 }
  0x3d   : > { %954 = vrot.lane.b32.xlu1 %v2364_v6, %s2260_s18 }
  0x40   : > { %1278 = vrot.lane.b32.xlu0 %v2354_v3, %s2261_s19 }
  0x41   : > { %1280 = vrot.lane.b32.xlu1 %v2356_v4, %s2261_s19 }
  0x44   : > { %1276 = vrot.lane.b32.xlu0 %v2349_v1, %s2261_s19 }
  0x45   : > { %1282 = vrot.lane.b32.xlu1 %v2364_v6, %s2261_s19 }
  0x48   : > { %1284 = vrot.lane.b32.xlu0 %v421_v7, %s2261_s19 }
  0x49   : > { %1450 = vrot.lane.b32.xlu1 %v2354_v3, %s2262_s20 }
  0x4c   : > { %1452 = vrot.lane.b32.xlu0 %v2356_v4, %s2262_s20 }
  0x4d   : > { %1448 = vrot.lane.b32.xlu1 %v2349_v1, %s2262_s20 }
  0x50   : > { %1454 = vrot.lane.b32.xlu0 %v2364_v6, %s2262_s20 }
  0x51   : > { %1456 = vrot.lane.b32.xlu1 %v421_v7, %s2262_s20 }
  0x54   : > { %1622 = vrot.lane.b32.xlu0 %v2354_v3, %s2263_s21 }
  0x55   : > { %1624 = vrot.lane.b32.xlu1 %v2356_v4, %s2263_s21 }
  0x58   : > { %1620 = vrot.lane.b32.xlu0 %v2349_v1, %s2263_s21 }
  0x59   : > { %1626 = vrot.lane.b32.xlu1 %v2364_v6, %s2263_s21 }
  0x5c   : > { %1628 = vrot.lane.b32.xlu0 %v421_v7, %s2263_s21 }
  0x5d   : > { %1794 = vrot.lane.b32.xlu1 %v2354_v3, %s2265_s22 }
  0x60   : > { %1796 = vrot.lane.b32.xlu0 %v2356_v4, %s2265_s22 }
  0x61   : > { %1792 = vrot.lane.b32.xlu1 %v2349_v1, %s2265_s22 }
  0x64   : > { %1798 = vrot.lane.b32.xlu0 %v2364_v6, %s2265_s22 }
  0x65   : > { %1800 = vrot.lane.b32.xlu1 %v421_v7, %s2265_s22 }
  0x68   : > { %1967 = vperm.xlu0 %2244, %v1964_v9  }
  0x8a   : > { %v439_v10 = vpop.permute.xlu0 %438 }
  0x8b   : > { %v437_v11 = vpop.permute.xlu1 %436 }
  0x8c   : > { %v447_v16 = vsel %vm446_vm1, %v437_v11, %v439_v10 }
  0x8e   : > { %v441_v12 = vpop.permute.xlu0 %440 }
  0x8f   : > { %v443_v13 = vpop.permute.xlu1 %442  ;;  %v448_v14 = vsel %vm446_vm1, %v439_v10, %v441_v12 }
  0x90   : > { %2151 = vmatprep.subr.msk.mxu0 %vm455_vm2, %v448_v14  ;;  %v449_v20 = vsel %vm446_vm1, %v441_v12, %v443_v13  ;;  %v433_v14 = vld [vmem:[%s2552_s4 + $0x38] sm:$0xff] }
  0x91   : > { %2152 = vmatpush1.msk.msra.mxu0 %vm455_vm2, %v447_v16 }
  0x92   : > { %v445_v17 = vpop.permute.xlu0 %444  ;;  %2153 = vmatmul.mubr.msk.f32.vlgmr.msra.gmra.mxu0 %vm451_vm3, %v427_v15 }
  0x93   : > { %v609_v18 = vpop.permute.xlu1 %608  ;;  %v450_v19 = vsel %vm446_vm1, %v443_v13, %v445_v17  ;;  %696 = vmatprep.mubr.f32.mxu0 %v2257_v5 }
  0x94   : > { %2154 = vmatprep.subr.msk.mxu1 %vm455_vm2, %v450_v19 }
  0x95   : > { %2155 = vmatpush1.msk.msra.mxu1 %vm455_vm2, %v449_v20 }
  0x96   : > { %v611_v21 = vpop.permute.xlu0 %610  ;;  %2156 = vmatmul.mubr.msk.f32.vlgmr.msra.gmra.mxu1 %vm451_vm3, %v427_v15 }
  0x97   : > { %v607_v22 = vpop.permute.xlu1 %606  ;;  %v618_v23 = vsel %vm616_vm4, %v609_v18, %v611_v21  ;;  %767 = vmatprep.mubr.f32.mxu1 %v2257_v5 }
  0x98   : > { %v617_v24 = vsel %vm616_vm4, %v607_v22, %v609_v18  ;;  %2157 = vmatprep.subr.msk.mxu0 %vm455_vm2, %v618_v23 }
  0x99   : > { %2158 = vmatpush1.msk.msra.mxu0 %vm455_vm2, %v617_v24  ;;  %v434_v24 = vld [vmem:[%s2552_s4 + $0x40] sm:$0xff] }
  0x9a   : > { %v613_v26 = vpop.permute.xlu0 %612  ;;  %2159 = vmatmul.mubr.msk.f32.vlgmr.msra.gmra.mxu0 %vm451_vm3, %v426_v25 }
  0x9b   : > { %v615_v27 = vpop.permute.xlu1 %614  ;;  %v619_v28 = vsel %vm616_vm4, %v611_v21, %v613_v26  ;;  %864 = vmatprep.mubr.f32.mxu0 %v2257_v5 }
  0x9c   : > { %v620_v29 = vsel %vm616_vm4, %v613_v26, %v615_v27 }
  0x9d   : > { %2160 = vmatprep.subr.msk.mxu1 %vm455_vm2, %v620_v29 }
  0x9e   : > { %2161 = vmatpush1.msk.msra.mxu1 %vm455_vm2, %v619_v28  ;;  %v777_v30 = vpop.permute.xlu0 %776 }
  0x9f   : > { %v779_v31 = vpop.permute.xlu1 %778  ;;  %2162 = vmatmul.mubr.msk.f32.vlgmr.msra.gmra.mxu1 %vm451_vm3, %v426_v25 }
  0xa0   : > { %v786_v32 = vsel %vm784_vm5, %v777_v30, %v779_v31  ;;  %935 = vmatprep.mubr.f32.mxu1 %v2257_v5 }
  0xa1   : > { %2163 = vmatprep.subr.msk.mxu0 %vm455_vm2, %v786_v32 }
  0xa2   : > { %v775_v33 = vpop.permute.xlu0 %774 }
  0xa3   : > { %v781_v34 = vpop.permute.xlu1 %780  ;;  %v785_v36 = vsel %vm784_vm5, %v775_v33, %v777_v30 }
  0xa4   : > { %2164 = vmatpush1.msk.msra.mxu0 %vm455_vm2, %v785_v36  ;;  %v787_v40 = vsel %vm784_vm5, %v779_v31, %v781_v34 }
  0xa5   : > { %2165 = vmatmul.mubr.msk.f32.vlgmr.msra.gmra.mxu0 %vm451_vm3, %v428_v35 }
  0xa6   : > { %v783_v37 = vpop.permute.xlu0 %782  ;;  %1036 = vmatprep.mubr.f32.mxu0 %v2257_v5 }
  0xa7   : > { %v949_v38 = vpop.permute.xlu1 %948  ;;  %v788_v39 = vsel %vm784_vm5, %v781_v34, %v783_v37 }
  0xa8   : > { %2166 = vmatprep.subr.msk.mxu1 %vm455_vm2, %v788_v39 }
  0xa9   : > { %2167 = vmatpush1.msk.msra.mxu1 %vm455_vm2, %v787_v40 }
  0xaa   : > { %v951_v41 = vpop.permute.xlu0 %950  ;;  %2168 = vmatmul.mubr.msk.f32.vlgmr.msra.gmra.mxu1 %vm451_vm3, %v428_v35 }
  0xab   : > { %v947_v42 = vpop.permute.xlu1 %946  ;;  %v958_v43 = vsel %vm956_vm6, %v949_v38, %v951_v41  ;;  %1107 = vmatprep.mubr.f32.mxu1 %v2257_v5 }
  0xac   : > { %v957_v44 = vsel %vm956_vm6, %v947_v42, %v949_v38  ;;  %2169 = vmatprep.subr.msk.mxu0 %vm455_vm2, %v958_v43 }
  0xad   : > { %2170 = vmatpush1.msk.msra.mxu0 %vm455_vm2, %v957_v44 }
  0xae   : > { %v953_v46 = vpop.permute.xlu0 %952  ;;  %2175 = vmatprep.subr.msk.mxu0 %vm455_vm2, %v2354_v3  ;;  %2171 = vmatmul.mubr.msk.f32.vlgmr.msra.gmra.mxu0 %vm451_vm3, %v429_v45 }
  0xaf   : > { %v955_v47 = vpop.permute.xlu1 %954  ;;  %v959_v48 = vsel %vm956_vm6, %v951_v41, %v953_v46  ;;  %2176 = vmatpush1.msk.msra.mxu0 %vm455_vm2, %v2349_v1  ;;  %1193 = vmatprep.mubr.f32.mxu0 %v2257_v5 }
  0xb0   : > { %v960_v49 = vsel %vm956_vm6, %v953_v46, %v955_v47 }
  0xb1   : > { %2172 = vmatprep.subr.msk.mxu1 %vm455_vm2, %v960_v49 }
  0xb2   : > { %2173 = vmatpush1.msk.msra.mxu1 %vm455_vm2, %v959_v48  ;;  %v1279_v51 = vpop.permute.xlu0 %1278  ;;  %2177 = vmatmul.mubr.msk.f32.vlgmr.msra.gmra.mxu0 %vm451_vm3, %v430_v50 }
  0xb3   : > { %v1281_v52 = vpop.permute.xlu1 %1280  ;;  %2174 = vmatmul.mubr.msk.f32.vlgmr.msra.gmra.mxu1 %vm451_vm3, %v429_v45  ;;  %2178 = vmatprep.subr.msk.mxu1 %vm455_vm2, %v2364_v6 }
  0xb4   : > { %v1288_v53 = vsel %vm1286_vm7, %v1279_v51, %v1281_v52  ;;  %1264 = vmatprep.mubr.f32.mxu1 %v2257_v5  ;;  %2179 = vmatpush1.msk.msra.mxu1 %vm455_vm2, %v2356_v4 }
  0xb5   : > { %2181 = vmatprep.subr.msk.mxu0 %vm455_vm2, %v1288_v53  ;;  %1366 = vmatprep.mubr.f32.mxu0 %v2257_v5 }
  0xb6   : > { %v1277_v54 = vpop.permute.xlu0 %1276 }
  0xb7   : > { %v1283_v55 = vpop.permute.xlu1 %1282  ;;  %2180 = vmatmul.mubr.msk.f32.vlgmr.msra.gmra.mxu1 %vm451_vm3, %v430_v50  ;;  %v1287_v57 = vsel %vm1286_vm7, %v1277_v54, %v1279_v51 }
  0xb8   : > { %1437 = vmatprep.mubr.f32.mxu1 %v2257_v5  ;;  %2182 = vmatpush1.msk.msra.mxu0 %vm455_vm2, %v1287_v57  ;;  %v1289_v61 = vsel %vm1286_vm7, %v1281_v52, %v1283_v55 }
  0xb9   : > { %2183 = vmatmul.mubr.msk.f32.vlgmr.msra.gmra.mxu0 %vm451_vm3, %v431_v56 }
  0xba   : > { %v1285_v58 = vpop.permute.xlu0 %1284  ;;  %1538 = vmatprep.mubr.f32.mxu0 %v2257_v5 }
  0xbb   : > { %v1451_v59 = vpop.permute.xlu1 %1450  ;;  %v1290_v60 = vsel %vm1286_vm7, %v1283_v55, %v1285_v58  ;;  %v1981_v55 = vlaneseq }
  0xbc   : > { %2184 = vmatprep.subr.msk.mxu1 %vm455_vm2, %v1290_v60 }
  0xbd   : > { %2185 = vmatpush1.msk.msra.mxu1 %vm455_vm2, %v1289_v61  ;;  %v1978_v61 = vld [vmem:[%s400_s14] sm:$0xf] }
  0xbe   : > { %v1453_v62 = vpop.permute.xlu0 %1452  ;;  %2186 = vmatmul.mubr.msk.f32.vlgmr.msra.gmra.mxu1 %vm451_vm3, %v431_v56  ;;  %vm1979_vm11 = vcmp.gt.f32.partialorder %v1978_v61, 0.5 }
  0xbf   : > { %v1449_v63 = vpop.permute.xlu1 %1448  ;;  %v1460_v0 = vsel %vm1458_vm8, %v1451_v59, %v1453_v62  ;;  %1609 = vmatprep.mubr.f32.mxu1 %v2257_v5 }
  0xc0   : > { %v1459_v1 = vsel %vm1458_vm8, %v1449_v63, %v1451_v59  ;;  %2187 = vmatprep.subr.msk.mxu0 %vm455_vm2, %v1460_v0  ;;  %v1982_v0 = vshrl.u32 %v1981_v55, 7 }
  0xc1   : > { %2188 = vmatpush1.msk.msra.mxu0 %vm455_vm2, %v1459_v1 }
  0xc2   : > { %v1455_v3 = vpop.permute.xlu0 %1454  ;;  %2189 = vmatmul.mubr.msk.f32.vlgmr.msra.gmra.mxu0 %vm451_vm3, %v432_v2 }
  0xc3   : > { %v1457_v4 = vpop.permute.xlu1 %1456  ;;  %v1461_v6 = vsel %vm1458_vm8, %v1453_v62, %v1455_v3  ;;  %1710 = vmatprep.mubr.f32.mxu0 %v2257_v5 }
  0xc4   : > { %v1462_v7 = vsel %vm1458_vm8, %v1455_v3, %v1457_v4 }
  0xc5   : > { %2190 = vmatprep.subr.msk.mxu1 %vm455_vm2, %v1462_v7 }
  0xc6   : > { %2191 = vmatpush1.msk.msra.mxu1 %vm455_vm2, %v1461_v6  ;;  %v1623_v9 = vpop.permute.xlu0 %1622 }
  0xc7   : > { %2192 = vmatmul.mubr.msk.f32.vlgmr.msra.gmra.mxu1 %vm451_vm3, %v432_v2  ;;  %v1625_v10 = vpop.permute.xlu1 %1624 }
  0xc8   : > { %v1632_v11 = vsel %vm1630_vm9, %v1623_v9, %v1625_v10  ;;  %1781 = vmatprep.mubr.f32.mxu1 %v2257_v5 }
  0xc9   : > { %2193 = vmatprep.subr.msk.mxu0 %vm455_vm2, %v1632_v11 }
  0xca   : > { %v1621_v12 = vpop.permute.xlu0 %1620 }
  0xcb   : > { %v1627_v13 = vpop.permute.xlu1 %1626  ;;  %v1631_v15 = vsel %vm1630_vm9, %v1621_v12, %v1623_v9  ;;  %v1980_v12 = vsel %vm1979_vm11, 1, %v2264_v8 }
  0xcc   : > { %2194 = vmatpush1.msk.msra.mxu0 %vm455_vm2, %v1631_v15  ;;  %v1633_v19 = vsel %vm1630_vm9, %v1625_v10, %v1627_v13  ;;  %v1983_v10 = vsub.s32 0, %v1982_v0  ;;  %v1987_v15 = vsub.s32 1, %v1982_v0 }
  0xcd   : > { %2195 = vmatmul.mubr.msk.f32.vlgmr.msra.gmra.mxu0 %vm451_vm3, %v433_v14 }
  0xce   : > { %v1629_v16 = vpop.permute.xlu0 %1628  ;;  %1882 = vmatprep.mubr.f32.mxu0 %v2257_v5 }
  0xcf   : > { %v1795_v17 = vpop.permute.xlu1 %1794  ;;  %v1634_v18 = vsel %vm1630_vm9, %v1627_v13, %v1629_v16 }
  0xd0   : > { %2196 = vmatprep.subr.msk.mxu1 %vm455_vm2, %v1634_v18 }
  0xd1   : > { %2197 = vmatpush1.msk.msra.mxu1 %vm455_vm2, %v1633_v19 }
  0xd2   : > { %v1797_v20 = vpop.permute.xlu0 %1796  ;;  %2198 = vmatmul.mubr.msk.f32.vlgmr.msra.gmra.mxu1 %vm451_vm3, %v433_v14 }
  0xd3   : > { %v1793_v21 = vpop.permute.xlu1 %1792  ;;  %v1804_v22 = vsel %vm1802_vm10, %v1795_v17, %v1797_v20  ;;  %1953 = vmatprep.mubr.f32.mxu1 %v2257_v5 }
  0xd4   : > { %v1803_v23 = vsel %vm1802_vm10, %v1793_v21, %v1795_v17  ;;  %2199 = vmatprep.subr.msk.mxu0 %vm455_vm2, %v1804_v22  ;;  %v1984_v21 = vrot.slane %v1980_v12, %v1983_v10 }
  0xd5   : > { %2200 = vmatpush1.msk.msra.mxu0 %vm455_vm2, %v1803_v23 }
  0xd6   : > { %v1799_v25 = vpop.permute.xlu0 %1798  ;;  %2201 = vmatmul.mubr.msk.f32.vlgmr.msra.gmra.mxu0 %vm451_vm3, %v434_v24  ;;  %vm1997_vm12 = vcmp.eq.s32.totalorder %v1984_v21, 1 }
  0xd7   : > { %v1801_v26 = vpop.permute.xlu1 %1800  ;;  %v1805_v27 = vsel %vm1802_vm10, %v1797_v20, %v1799_v25  ;;  %v1991_v20 = vsub.s32 2, %v1982_v0 }
  0xd8   : > { %v1806_v28 = vsel %vm1802_vm10, %v1799_v25, %v1801_v26 }
  0xd9   : > { %2202 = vmatprep.subr.msk.mxu1 %vm455_vm2, %v1806_v28 }
  0xda   : > { %2203 = vmatpush1.msk.msra.mxu1 %vm455_vm2, %v1805_v27  ;;  %v1988_v27 = vrot.slane %v1980_v12, %v1987_v15 }
  0xdb   : > { %2204 = vmatmul.mubr.msk.f32.vlgmr.msra.gmra.mxu1 %vm451_vm3, %v434_v24 }
  0xdc   : > { %vm1998_vm13 = vcmp.eq.s32.totalorder %v1988_v27, 1 }
 0x152   : > { %v530_v29 = vpop.f32.mrf.mxu0 }
 0x154   : > { %v532_v30 = vpop.f32.mrf.mxu0 }
 0x156   : > { %v601_v31 = vpop.f32.mrf.mxu1 }
 0x158   : > { %v603_v32 = vpop.f32.mrf.mxu1 }
 0x15a   : > { %v698_v5 = vpop.f32.mrf.mxu0 }
 0x15b   : > { %v699_v47 = vadd.f32 %v698_v5, %v530_v29  ;;  %v1968_v29 = vpop.permute.xlu0 %1967 }
 0x15c   : > { %v700_v33 = vpop.f32.mrf.mxu0 }
 0x15d   : > { %v701_v48 = vadd.f32 %v700_v33, %v532_v30  ;;  %v1995_v30 = vsub.s32 3, %v1982_v0  ;;  %v1992_v33 = vrot.slane %v1980_v12, %v1991_v20 }
 0x15f   : > { %v769_v34 = vpop.f32.mrf.mxu1  ;;  %vm1999_vm14 = vcmp.eq.s32.totalorder %v1992_v33, 1 }
 0x160   : > { %v770_v51 = vadd.f32 %v769_v34, %v601_v31 }
 0x161   : > { %v771_v36 = vpop.f32.mrf.mxu1 }
 0x162   : > { %v772_v53 = vadd.f32 %v771_v36, %v603_v32 }
 0x165   : > { %v866_v35 = vpop.f32.mrf.mxu0 }
 0x166   : > { %v942_v52 = vadd.f32 %v866_v35, %v699_v47 }
 0x167   : > { %v868_v37 = vpop.f32.mrf.mxu0 }
 0x168   : > { %v943_v54 = vadd.f32 %v868_v37, %v701_v48 }
 0x16a   : > { %v937_v38 = vpop.f32.mrf.mxu1 }
 0x16b   : > { %v944_v58 = vadd.f32 %v937_v38, %v770_v51 }
 0x16c   : > { %v939_v40 = vpop.f32.mrf.mxu1 }
 0x16d   : > { %v945_v62 = vadd.f32 %v939_v40, %v772_v53 }
 0x16e   : > { %v1038_v39 = vpop.f32.mrf.mxu0 }
 0x16f   : > { %v1114_v59 = vadd.f32 %v1038_v39, %v942_v52 }
 0x170   : > { %v1040_v41 = vpop.f32.mrf.mxu0 }
 0x171   : > { %v1115_v63 = vadd.f32 %v1040_v41, %v943_v54  ;;  %v1996_v41 = vrot.slane %v1980_v12, %v1995_v30 }
 0x172   : > { %v1195_v43 = vpop.f32.mrf.mxu0 }
 0x173   : > { %v1109_v42 = vpop.f32.mrf.mxu1  ;;  %v1271_v3 = vadd.f32 %v1195_v43, %v1114_v59  ;;  %vm2000_vm15 = vcmp.eq.s32.totalorder %v1996_v41, 1 }
 0x174   : > { %v1197_v45 = vpop.f32.mrf.mxu0  ;;  %v1116_v2 = vadd.f32 %v1109_v42, %v944_v58 }
 0x175   : > { %v1111_v44 = vpop.f32.mrf.mxu1  ;;  %v1272_v9 = vadd.f32 %v1197_v45, %v1115_v63  ;;  %v2005_v63 = vld [vmem:[%s2555_s7] sm:$0xff] }
 0x176   : > { %v1117_v7 = vadd.f32 %v1111_v44, %v945_v62 }
 0x177   : > { %v1266_v46 = vpop.f32.mrf.mxu1 }
 0x178   : > { %v1273_v13 = vadd.f32 %v1266_v46, %v1116_v2 }
 0x179   : > { %v1368_v49 = vpop.f32.mrf.mxu0  ;;  %v1268_v50 = vpop.f32.mrf.mxu1 }
 0x17a   : > { %v1444_v14 = vadd.f32 %v1368_v49, %v1271_v3  ;;  %v1274_v17 = vadd.f32 %v1268_v50, %v1117_v7 }
 0x17b   : > { %v1370_v56 = vpop.f32.mrf.mxu0 }
 0x17c   : > { %v1445_v18 = vadd.f32 %v1370_v56, %v1272_v9 }
 0x17e   : > { %v1439_v57 = vpop.f32.mrf.mxu1 }
 0x17f   : > { %v1446_v24 = vadd.f32 %v1439_v57, %v1273_v13 }
 0x180   : > { %v1441_v1 = vpop.f32.mrf.mxu1 }
 0x181   : > { %v1447_v31 = vadd.f32 %v1441_v1, %v1274_v17  ;;  %v2013_v1 = vld [vmem:[%s2556_s8] sm:$0xff] }
 0x182   : > { %v1540_v60 = vpop.f32.mrf.mxu0 }
 0x183   : > { %v1616_v19 = vadd.f32 %v1540_v60, %v1444_v14 }
 0x184   : > { %v1542_v4 = vpop.f32.mrf.mxu0 }
 0x185   : > { %v1617_v25 = vadd.f32 %v1542_v4, %v1445_v18 }
 0x187   : > { %v1611_v6 = vpop.f32.mrf.mxu1 }
 0x188   : > { %v1618_v8 = vadd.f32 %v1611_v6, %v1446_v24 }
 0x189   : > { %v1613_v16 = vpop.f32.mrf.mxu1 }
 0x18a   : > { %v1619_v36 = vadd.f32 %v1613_v16, %v1447_v31 }
 0x18d   : > { %v1712_v11 = vpop.f32.mrf.mxu0 }
 0x18e   : > { %v1788_v26 = vadd.f32 %v1712_v11, %v1616_v19 }
 0x18f   : > { %v1714_v22 = vpop.f32.mrf.mxu0 }
 0x190   : > { %v1789_v5 = vadd.f32 %v1714_v22, %v1617_v25 }
 0x192   : > { %v1783_v23 = vpop.f32.mrf.mxu1 }
 0x193   : > { %v1790_v37 = vadd.f32 %v1783_v23, %v1618_v8 }
 0x194   : > { %v1785_v34 = vpop.f32.mrf.mxu1 }
 0x195   : > { %v1791_v42 = vadd.f32 %v1785_v34, %v1619_v36 }
 0x196   : > { %v1884_v28 = vpop.f32.mrf.mxu0 }
 0x197   : > { %v1960_v32 = vadd.f32 %v1884_v28, %v1788_v26 }
 0x198   : > { %v1886_v35 = vpop.f32.mrf.mxu0 }
 0x199   : > { %v1970_v38 = vadd.f32 %v1968_v29, %v1960_v32  ;;  %v1961_v39 = vadd.f32 %v1886_v35, %v1789_v5 }
 0x19b   : > { %v1955_v40 = vpop.f32.mrf.mxu1  ;;  %1974 = vst [vmem:[%s2336_s25] sm:$0xff] %v1970_v38  ;;  %v1971_v43 = vadd.f32 %v1968_v29, %v1961_v39  ;;  %v2001_v45 = vsel %vm1997_vm12, %v1970_v38, 0.0 }
 0x19c   : > { %v1962_v44 = vadd.f32 %v1955_v40, %v1790_v37  ;;  %v2014_v52 = vmul.f32 %v2001_v45, %v2001_v45 }
 0x19d   : > { %v1957_v46 = vpop.f32.mrf.mxu1  ;;  %1975 = vst [vmem:[%s2336_s25 + $0x8] sm:$0xff] %v1971_v43  ;;  %v2002_v47 = vsel %vm1998_vm13, %v1971_v43, 0.0 }
 0x19e   : > { %v1972_v48 = vadd.f32 %v1968_v29, %v1962_v44  ;;  %v1963_v49 = vadd.f32 %v1957_v46, %v1791_v42  ;;  %v2015_v50 = vmul.f32 %v2002_v47, %v2002_v47  ;;  %v2006_v51 = vadd.f32 %v2002_v47, %v2001_v45 }
 0x1a0   : > { %1976 = vst [vmem:[%s2336_s25 + $0x10] sm:$0xff] %v1972_v48  ;;  %v1973_v53 = vadd.f32 %v1968_v29, %v1963_v49  ;;  %v2003_v54 = vsel %vm1999_vm14, %v1972_v48, 0.0  ;;  %v2018_v57 = vadd.f32 %v2015_v50, %v2014_v52 }
 0x1a1   : > { %v2007_v55 = vadd.f32 %v2006_v51, %v2003_v54  ;;  %v2016_v56 = vmul.f32 %v2003_v54, %v2003_v54 }
 0x1a2   : > { %1977 = vst [vmem:[%s2336_s25 + $0x18] sm:$0xff] %v1973_v53  ;;  %v2004_v58 = vsel %vm2000_vm15, %v1973_v53, 0.0 }
 0x1a3   : > { %v2008_v59 = vadd.f32 %v2007_v55, %v2004_v58  ;;  %v2017_v60 = vmul.f32 %v2004_v58, %v2004_v58  ;;  %v2019_v61 = vadd.f32 %v2018_v57, %v2016_v56 }
 0x1a5   : > { %2009 = vadd.xlane.f32.xlu1 %v2008_v59  ;;  %v2020_v62 = vadd.f32 %v2019_v61, %v2017_v60 }
 0x1a7   : > { %2021 = vadd.xlane.f32.xlu0 %v2020_v62 }
 0x22e   : > { %v2010_v0 = vpop.xlane.xlu1 %2009 }
 0x22f   : > { %v2011_v2 = vadd.f32 %v2010_v0, %v2005_v63 }
 0x230   : > { %v2022_v3 = vpop.xlane.xlu0 %2021 }
 0x231   : > { %2012 = vst.msk [vmem:[%s2555_s7] sm:$0xff] %vm956_vm6, %v2011_v2  ;;  %v2023_v4 = vadd.f32 %v2022_v3, %v2013_v1 }
 0x233   : > { %2024 = vst.msk [vmem:[%s2556_s8] sm:$0xff] %vm956_vm6, %v2023_v4 }
 0x234 PF: > { %s19_s27 = sadd.s32 1, %s2253_s27  }
 0x235   : > { %p16_p7 = scmp.ge.s32.totalorder %s19_s27, 4  }
 0x237   :  { %18 = sbr.rel (!%p16_p7) target bundleno = 1 (0x1), region = 103 }

// kernel: double_conv_forward.4
= control target key start
LH: loop header
LB: loop body
LE: loop exit
PB: predicated region body
PF: predicated region fallthrough
CT: control target
= control target key end

     0   :  { %s2648_s29 = smov 0   ;;  %s2952_s0 = inlined_call_operand.vmem [shape: f32[8,2048], index: 0, kind: input, shape index: {}, may-alias: {0,1,2}]   ;;  %s2953_s1 = inlined_call_operand.vmem [shape: f32[8,2048], index: 1, kind: input, shape index: {}, may-alias: {0,1,2}]   ;;  %s2954_s2 = inlined_call_operand.vmem [shape: f32[8,2048], index: 2, kind: input, shape index: {}, may-alias: {0,1,2}]   ;;  %s2955_s3 = inlined_call_operand.vmem [shape: f32[1,2048], index: 3, kind: input, shape index: {}, may-alias: {3,4,5}]   ;;  %s2956_s4 = inlined_call_operand.vmem [shape: f32[1,2048], index: 4, kind: input, shape index: {}, may-alias: {3,4,5}]   ;;  %s2957_s5 = inlined_call_operand.vmem [shape: f32[1,2048], index: 5, kind: input, shape index: {}, may-alias: {3,4,5}]   ;;  %s2958_s6 = inlined_call_operand.vmem [shape: f32[8,1], index: 6, kind: input, shape index: {}]   ;;  %s2959_s7 = inlined_call_operand.vmem [shape: f32[8,1], index: 7, kind: input, shape index: {}]   ;;  %s2960_s8 = inlined_call_operand.vmem [shape: f32[8,1], index: 8, kind: input, shape index: {}]   ;;  %s2961_s9 = inlined_call_operand.vmem [shape: f32[8,1], index: 9, kind: input, shape index: {}]   ;;  %s2962_s10 = inlined_call_operand.vmem [shape: f32[9,8,8], index: 10, kind: input, shape index: {}]   ;;  %s2963_s11 = inlined_call_operand.vmem [shape: f32[8,1], index: 11, kind: input, shape index: {}]   ;;  %s2964_s12 = inlined_call_operand.vmem [shape: f32[8,2048], index: 12, kind: output, shape index: {0}]   ;;  %s2965_s13 = inlined_call_operand.vmem [shape: f32[8,1], index: 13, kind: output, shape index: {1}]   ;;  %s2966_s14 = inlined_call_operand.vmem [shape: f32[8,1], index: 14, kind: output, shape index: {2}]  }
   0x1   :  { %2969 = sst [smem:[#allocation3_spill]] %s2952_s0 }
   0x2   :  { %2970 = sst [smem:[#allocation4_spill]] %s2953_s1 }
   0x3   :  { %2971 = sst [smem:[#allocation5_spill]] %s2962_s10 }
   0x4   :  { %2972 = sst [smem:[#allocation6_spill]] %s2963_s11 }
   0x5 LB: > { %2973 = sst [smem:[#allocation2_spill]] %s2560_s29  ;;  %s2447_s30 = sadd.s32 4294967295, %s2560_s29   ;;  %s2560_s29 = sphi %s2648_s29, %s25_s29  }
   0x6   : > { %p2463_p0 = scmp.ge.s32.totalorder %s2560_s29, 1  ;;  %p502_p1 = scmp.lt.s32.totalorder %s2560_s29, 3 }
   0x8   : > { %p503_p2 = pnand %p2463_p0, %p502_p1 }
   0x9   : > { %s2518_s15 = sshll.u32 (!%p503_p2), %s2447_s30, 2  ;;  %s2974_s1 = sld [smem:[#allocation4_spill]] (!%p503_p2) }
   0xa   : > { %506 = sbr.rel (%p503_p2) target bundleno = 731 (0x2db), region = 68  ;;  %s2519_s16 = sadd.s32 (!%p503_p2), 4, %s2518_s15 }
   0xb   : > { %s2523_s17 = sadd.s32 (!%p503_p2), 8, %s2518_s15  ;;  %s2465_s18 = sadd.s32 (!%p503_p2), 4294967295, %s2519_s16 }
   0xc   : > { %p591_p3 = scmp.lt.s32.totalorder (!%p503_p2), %s2519_s16, 15  ;;  %p582_p4 = scmp.lt.s32.totalorder (!%p503_p2), %s2465_s18, 15 }
   0xd   : > { %p599_p5 = scmp.lt.s32.totalorder (!%p503_p2), %s2523_s17, 15  ;;  %s2975_s0 = sld [smem:[#allocation3_spill]] (!%p503_p2) }
   0xe   : > { %p2477_p6 = scmp.ne.s32.totalorder (!%p503_p2), %s2447_s30, 0 }
   0xf   : > { %s2988_s16 = smov (!%p591_p3, %s2519_s16), 15  ;;  %s2990_s18 = smov (!%p582_p4, %s2465_s18), 15 }
  0x10   : > { %s2468_s19 = sshll.u32 %s2988_s16, 3  ;;  %s2661_s22 = scalar_lea.vmem %s2956_s4, %s2988_s16 }
  0x11   : > { %s2466_s23 = sshll.u32 %s2990_s18, 3  ;;  %s2667_s26 = scalar_lea.vmem %s2974_s1, %s2468_s19 }
  0x12   : > { %s610_s11 = scalar_lea.vmem %s2955_s3, %s2990_s18  ;;  %s2992_s17 = smov (!%p599_p5, %s2523_s17), 15 }
  0x13   : > { %s2672_s15 = scalar_lea.vmem %s2975_s0, %s2466_s23  ;;  %s2683_s21 = scalar_lea.vmem %s2964_s12, %s2468_s19 }
  0x14   : > { %s2470_s24 = sshll.u32 %s2992_s17, 3  ;;  %s625_s27 = scalar_lea.vmem %s2957_s5, %s2992_s17 }
  0x15   : > { %s2693_s0 = scalar_lea.vmem %s2954_s2, %s2470_s24  ;;  %639 = sbr.rel (%p2477_p6) target bundleno = 28 (0x1c), region = 72 }
  0x1a   : > { %vm640_vm0 = vcmask 7168   ;;  %v2562_v0 = vmov 0.0  }
  0x1b   : > { %641 = vst.msk [vmem:[%s2965_s13] sm:$0xff] %vm640_vm0, %v2562_v0  ;;  %642 = vst.msk [vmem:[%s2966_s14] sm:$0xff] %vm640_vm0, %v2562_v0 }
  0x1c PF: > { %v643_v1 = vld [vmem:[%s2958_s6] sm:$0xff]  ;;  %v2563_v3 = vmov 0   ;;  %v667_v16 = vlaneseq  ;;  %v659_v30 = vld [vmem:[%s2667_s26 + $0x8] sm:$0xff]  ;;  %v661_v33 = vld [vmem:[%s2667_s26 + $0x18] sm:$0xff]  ;;  %s2566_s18 = smov 19   ;;  %s2568_s1 = smov 1  }
  0x1d   : > { %v645_v2 = vld [vmem:[%s2959_s7] sm:$0xff]  ;;  %2551 = vset.pattern.permute.xlu0 %v2563_v3  ;;  %v644_v4 = vmul.f32 0.001953125, %v643_v1  ;;  %v660_v40 = vld [vmem:[%s2667_s26 + $0x10] sm:$0xff]  ;;  %s2569_s16 = smov 127   ;;  %s2571_s17 = smov 110   ;;  %vm787_vm13 = vcmask 146432  }
  0x1e   : > { %v646_v5 = vmul.f32 0.001953125, %v645_v2  ;;  %v650_v10 = vld [vmem:[%s2960_s8] sm:$0xff]  ;;  %v2714_v17 = vshrl.u32 %v667_v16, 7  ;;  %s2984_s30 = sld [smem:[#allocation6_spill]]  ;;  %vm796_vm14 = vcmask 64512   ;;  %vm952_vm15 = vcmask 154624  }
  0x1f   : > { %v647_v6 = vmul.f32 %v644_v4, %v644_v4  ;;  %v654_v13 = vld [vmem:[%s2961_s9] sm:$0xff]  ;;  %s2985_s10 = sld [smem:[#allocation5_spill]]  ;;  %vm1116_vm0 = vcmask 138240  }
  0x20   : > { %v2717_v18 = vsub.s32 0, %v2714_v17  ;;  %v664_v19 = vld [vmem:[%s2661_s22] sm:$0xf]  ;;  %v673_v21 = vsub.s32 1, %v2714_v17  ;;  %v681_v22 = vsub.s32 3, %v2714_v17  ;;  %v677_v23 = vsub.s32 2, %v2714_v17 }
  0x21   : > { %v648_v7 = vsub.f32 %v646_v5, %v647_v6  ;;  %v663_v24 = vld [vmem:[%s610_s11] sm:$0x1]  ;;  %s2564_s11 = smov 18   ;;  %v2565_v5 = vmov 0.0  }
  0x22   : > { %v670_v20 = vrot.slane %v664_v19, %v2717_v18  ;;  %v674_v25 = vrot.slane %v664_v19, %v673_v21  ;;  %v682_v26 = vrot.slane %v664_v19, %v681_v22  ;;  %vm715_vm2 = vcmp.gt.f32.partialorder %v663_v24, 0.5  ;;  %v658_v29 = vld [vmem:[%s2667_s26] sm:$0xff]  ;;  %864 = vmatprep.mubr.f32.mxu0 %v2565_v5  ;;  %935 = vmatprep.mubr.f32.mxu1 %v2565_v5  ;;  %s2567_s26 = smov 17  }
  0x23   : > { %v649_v8 = vmax.f32 %v648_v7, 0.0  ;;  %v678_v27 = vrot.slane %v664_v19, %v677_v23  ;;  %v721_v32 = vsel %vm715_vm2, 1, %v2563_v3  ;;  %v657_v34 = vld [vmem:[%s2672_s15] sm:$0xff]  ;;  %vm1602_vm2 = vcmask 1039360  }
  0x24   : > { %vm716_vm1 = vcmp.gt.f32.partialorder %v670_v20, 0.5  ;;  %vm717_vm3 = vcmp.gt.f32.partialorder %v674_v25, 0.5  ;;  %vm719_vm4 = vcmp.gt.f32.partialorder %v682_v26, 0.5  ;;  %v730_v39 = vrot.slane %v721_v32, %v2717_v18  ;;  %v665_v7 = vld [vmem:[%s625_s27] sm:$0x1]  ;;  %s2572_s27 = smov 109  }
  0x25   : > { %v651_v9 = vadd.f32 1e-05, %v649_v8  ;;  %v722_v28 = vsel %vm716_vm1, 1, %v2563_v3  ;;  %vm718_vm5 = vcmp.gt.f32.partialorder %v678_v27, 0.5  ;;  %v723_v38 = vsel %vm717_vm3, 1, %v2563_v3  ;;  %v662_v8 = vld [vmem:[%s2693_s0] sm:$0xff] }
  0x26   : > { %v734_v35 = vrot.slane %v722_v28, %v2717_v18  ;;  %v725_v42 = vsel %vm719_vm4, 1, %v2563_v3  ;;  %v724_v45 = vsel %vm718_vm5, 1, %v2563_v3  ;;  %v738_v48 = vrot.slane %v723_v38, %v2717_v18  ;;  %s2570_s0 = smov 111   ;;  %v764_v26 = vld [vmem:[%s2985_s10 + $0x8] sm:$0xff] }
  0x27   : > { %2552 = vrsqrt.f32 %v651_v9  ;;  %v746_v53 = vrot.slane %v725_v42, %v2717_v18  ;;  %vm751_vm7 = vcmp.eq.s32.totalorder %v730_v39, 1  ;;  %v742_v59 = vrot.slane %v724_v45, %v2717_v18 }
  0x28   : > { %vm2758_vm6 = vcmp.eq.s32.totalorder %v734_v35, 1  ;;  %vm2777_vm8 = vcmp.eq.s32.totalorder %v738_v48, 1  ;;  %vm720_vm11 = vcmp.gt.f32.partialorder %v665_v7, 0.5  ;;  %v765_v48 = vld [vmem:[%s2985_s10 + $0x10] sm:$0xff]  ;;  %vm1284_vm1 = vcmask 7168  }
  0x29   : > { %vm2783_vm9 = vcmp.eq.s32.totalorder %v746_v53, 1  ;;  %vm2792_vm10 = vcmp.eq.s32.totalorder %v742_v59, 1  ;;  %vm1770_vm3 = vcmask 908288   ;;  %vm1938_vm4 = vcmask 900096  }
  0x2a   : > { %vm2106_vm5 = vcmask 891904  }
  0x34   : > { %v2553_v11 = vpop.eup %2552 }
  0x35   : > { %v653_v12 = vmul.f32 %v2553_v11, %v650_v10  ;;  %v726_v10 = vsel %vm720_vm11, 1, %v2563_v3 }
  0x37   : > { %689 = vperm.xlu0 %2551, %v653_v12   ;;  %v655_v14 = vmul.f32 %v653_v12, %v644_v4  ;;  %v750_v12 = vrot.slane %v726_v10, %v2717_v18  ;;  %v767_v10 = vld [vmem:[%s2985_s10 + $0x20] sm:$0xff] }
  0x39   : > { %v656_v15 = vsub.f32 %v654_v13, %v655_v14  ;;  %vm756_vm12 = vcmp.eq.s32.totalorder %v750_v12, 1 }
  0x3b   : > { %700 = vperm.xlu0 %2551, %v656_v15   ;;  %v2264_v15 = vld [vmem:[%s2984_s30] sm:$0xff] }
  0xb2   : > { %v2738_v31 = vpop.permute.xlu0 %689 }
  0xb3   : > { %v693_v36 = vmul.f32 %v2738_v31, %v658_v29  ;;  %v694_v37 = vmul.f32 %v2738_v31, %v659_v30  ;;  %v696_v41 = vmul.f32 %v2738_v31, %v661_v33  ;;  %v692_v44 = vmul.f32 %v2738_v31, %v657_v34 }
  0xb4   : > { %v695_v52 = vmul.f32 %v2738_v31, %v660_v40  ;;  %v697_v9 = vmul.f32 %v2738_v31, %v662_v8 }
  0xb6   : > { %v701_v43 = vpop.permute.xlu0 %700 }
  0xb7   : > { %v2753_v46 = vadd.f32 %v701_v43, %v693_v36  ;;  %v2755_v47 = vadd.f32 %v701_v43, %v694_v37  ;;  %v2762_v50 = vadd.f32 %v701_v43, %v696_v41  ;;  %v703_v51 = vadd.f32 %v701_v43, %v692_v44  ;;  %v763_v36 = vld [vmem:[%s2985_s10] sm:$0xff] }
  0xb8   : > { %v2767_v56 = vadd.f32 %v701_v43, %v695_v52  ;;  %v708_v11 = vadd.f32 %v701_v43, %v697_v9 }
  0xb9   : > { %v710_v54 = vmax.f32 %v2753_v46, 0.0  ;;  %v709_v55 = vmax.f32 %v703_v51, 0.0  ;;  %v711_v57 = vmax.f32 %v2755_v47, 0.0  ;;  %v713_v61 = vmax.f32 %v2762_v50, 0.0 }
  0xba   : > { %v712_v0 = vmax.f32 %v2767_v56, 0.0  ;;  %v714_v13 = vmax.f32 %v708_v11, 0.0 }
  0xbb   : > { %v2774_v58 = vsel %vm2758_vm6, %v710_v54, 0.0  ;;  %v757_v62 = vsel %vm751_vm7, %v709_v55, 0.0  ;;  %v759_v1 = vsel %vm2777_vm8, %v711_v57, 0.0  ;;  %v761_v4 = vsel %vm2783_vm9, %v713_v61, 0.0 }
  0xbc   : > { %779 = vrot.lane.b32.xlu1 %v2774_v58, %s2564_s11  ;;  %777 = vrot.lane.b32.xlu0 %v757_v62, %s2564_s11  ;;  %v760_v6 = vsel %vm2792_vm10, %v712_v0, 0.0  ;;  %v762_v14 = vsel %vm756_vm12, %v714_v13, 0.0 }
  0xc0   : > { %781 = vrot.lane.b32.xlu1 %v759_v1, %s2564_s11  ;;  %785 = vrot.lane.b32.xlu0 %v761_v4, %s2564_s11 }
  0xc4   : > { %783 = vrot.lane.b32.xlu1 %v760_v6, %s2564_s11  ;;  %946 = vrot.lane.b32.xlu0 %v759_v1, %s2566_s18 }
  0xc8   : > { %944 = vrot.lane.b32.xlu1 %v2774_v58, %s2566_s18  ;;  %948 = vrot.lane.b32.xlu0 %v760_v6, %s2566_s18 }
  0xcc   : > { %942 = vrot.lane.b32.xlu1 %v757_v62, %s2566_s18  ;;  %1108 = vrot.lane.b32.xlu0 %v2774_v58, %s2567_s26 }
  0xd0   : > { %950 = vrot.lane.b32.xlu1 %v761_v4, %s2566_s18  ;;  %1106 = vrot.lane.b32.xlu0 %v757_v62, %s2567_s26 }
  0xd4   : > { %1110 = vrot.lane.b32.xlu1 %v759_v1, %s2567_s26  ;;  %1114 = vrot.lane.b32.xlu0 %v761_v4, %s2567_s26 }
  0xd8   : > { %1112 = vrot.lane.b32.xlu1 %v760_v6, %s2567_s26  ;;  %1278 = vrot.lane.b32.xlu0 %v759_v1, %s2568_s1 }
  0xdc   : > { %1276 = vrot.lane.b32.xlu1 %v2774_v58, %s2568_s1  ;;  %1280 = vrot.lane.b32.xlu0 %v760_v6, %s2568_s1 }
  0xe0   : > { %1274 = vrot.lane.b32.xlu1 %v757_v62, %s2568_s1  ;;  %1594 = vrot.lane.b32.xlu0 %v759_v1, %s2569_s16 }
  0xe4   : > { %1282 = vrot.lane.b32.xlu1 %v761_v4, %s2568_s1  ;;  %1592 = vrot.lane.b32.xlu0 %v2774_v58, %s2569_s16 }
  0xe8   : > { %1596 = vrot.lane.b32.xlu1 %v760_v6, %s2569_s16  ;;  %1600 = vrot.lane.b32.xlu0 %v762_v14, %s2569_s16 }
  0xec   : > { %1598 = vrot.lane.b32.xlu1 %v761_v4, %s2569_s16  ;;  %1764 = vrot.lane.b32.xlu0 %v760_v6, %s2570_s0 }
  0xf0   : > { %1762 = vrot.lane.b32.xlu1 %v759_v1, %s2570_s0  ;;  %1766 = vrot.lane.b32.xlu0 %v761_v4, %s2570_s0 }
  0xf4   : > { %1760 = vrot.lane.b32.xlu1 %v2774_v58, %s2570_s0  ;;  %1930 = vrot.lane.b32.xlu0 %v759_v1, %s2571_s17 }
  0xf8   : > { %1768 = vrot.lane.b32.xlu1 %v762_v14, %s2570_s0  ;;  %1928 = vrot.lane.b32.xlu0 %v2774_v58, %s2571_s17 }
  0xfc   : > { %1932 = vrot.lane.b32.xlu1 %v760_v6, %s2571_s17  ;;  %1936 = vrot.lane.b32.xlu0 %v762_v14, %s2571_s17 }
 0x100   : > { %1934 = vrot.lane.b32.xlu1 %v761_v4, %s2571_s17  ;;  %2100 = vrot.lane.b32.xlu0 %v760_v6, %s2572_s27  ;;  %v766_v6 = vld [vmem:[%s2985_s10 + $0x18] sm:$0xff] }
 0x104   : > { %2098 = vrot.lane.b32.xlu1 %v759_v1, %s2572_s27  ;;  %2102 = vrot.lane.b32.xlu0 %v761_v4, %s2572_s27 }
 0x108   : > { %2096 = vrot.lane.b32.xlu1 %v2774_v58, %s2572_s27  ;;  %2267 = vperm.xlu0 %2551, %v2264_v15   ;;  %v769_v15 = vld [vmem:[%s2985_s10 + $0x30] sm:$0xff] }
 0x10c   : > { %2104 = vrot.lane.b32.xlu1 %v762_v14, %s2572_s27 }
 0x12e   : > { %v780_v16 = vpop.permute.xlu1 %779  ;;  %v778_v19 = vpop.permute.xlu0 %777 }
 0x12f   : > { %v788_v27 = vsel %vm787_vm13, %v778_v19, %v780_v16 }
 0x132   : > { %v782_v20 = vpop.permute.xlu1 %781  ;;  %v786_v24 = vpop.permute.xlu0 %785 }
 0x133   : > { %v789_v25 = vsel %vm787_vm13, %v780_v16, %v782_v20 }
 0x134   : > { %830 = vmatprep.subr.mxu0 %v789_v25 }
 0x135   : > { %831 = vmatpush1.msra.mxu0 %v788_v27 }
 0x136   : > { %v784_v28 = vpop.permute.xlu1 %783  ;;  %2478 = vmatmul.mubr.msk.f32.vlgmr.msra.gmra.mxu0 %vm796_vm14, %v764_v26  ;;  %v947_v29 = vpop.permute.xlu0 %946 }
 0x137   : > { %v791_v30 = vsel %vm787_vm13, %v784_v28, %v786_v24  ;;  %v790_v31 = vsel %vm787_vm13, %v782_v20, %v784_v28  ;;  %1028 = vmatprep.mubr.f32.mxu0 %v2565_v5 }
 0x138   : > { %901 = vmatprep.subr.mxu1 %v791_v30 }
 0x139   : > { %902 = vmatpush1.msra.mxu1 %v790_v31 }
 0x13a   : > { %v945_v32 = vpop.permute.xlu1 %944  ;;  %2479 = vmatmul.mubr.msk.f32.vlgmr.msra.gmra.mxu1 %vm796_vm14, %v764_v26  ;;  %v949_v33 = vpop.permute.xlu0 %948 }
 0x13b   : > { %v954_v34 = vsel %vm952_vm15, %v945_v32, %v947_v29  ;;  %1099 = vmatprep.mubr.f32.mxu1 %v2565_v5  ;;  %v955_v42 = vsel %vm952_vm15, %v947_v29, %v949_v33  ;;  %v770_v29 = vld [vmem:[%s2985_s10 + $0x38] sm:$0xff] }
 0x13c   : > { %994 = vmatprep.subr.mxu0 %v954_v34 }
 0x13e   : > { %v943_v35 = vpop.permute.xlu1 %942  ;;  %v1109_v38 = vpop.permute.xlu0 %1108 }
 0x13f   : > { %v953_v37 = vsel %vm952_vm15, %v943_v35, %v945_v32 }
 0x140   : > { %995 = vmatpush1.msra.mxu0 %v953_v37 }
 0x141   : > { %2480 = vmatmul.mubr.msk.f32.vlgmr.msra.gmra.mxu0 %vm796_vm14, %v763_v36 }
 0x142   : > { %v951_v39 = vpop.permute.xlu1 %950  ;;  %1192 = vmatprep.mubr.f32.mxu0 %v2565_v5  ;;  %v1107_v40 = vpop.permute.xlu0 %1106 }
 0x143   : > { %v956_v41 = vsel %vm952_vm15, %v949_v33, %v951_v39  ;;  %v1117_v51 = vsel %vm1116_vm0, %v1107_v40, %v1109_v38  ;;  %v771_v39 = vld [vmem:[%s2985_s10 + $0x40] sm:$0xff] }
 0x144   : > { %1065 = vmatprep.subr.mxu1 %v956_v41 }
 0x145   : > { %1066 = vmatpush1.msra.mxu1 %v955_v42 }
 0x146   : > { %v1111_v43 = vpop.permute.xlu1 %1110  ;;  %2481 = vmatmul.mubr.msk.f32.vlgmr.msra.gmra.mxu1 %vm796_vm14, %v763_v36  ;;  %v1115_v44 = vpop.permute.xlu0 %1114 }
 0x147   : > { %v1118_v45 = vsel %vm1116_vm0, %v1109_v38, %v1111_v43  ;;  %1263 = vmatprep.mubr.f32.mxu1 %v2565_v5 }
 0x148   : > { %1158 = vmatprep.subr.mxu0 %v1118_v45 }
 0x149   : > { %1159 = vmatpush1.msra.mxu0 %v1117_v51 }
 0x14a   : > { %v1113_v52 = vpop.permute.xlu1 %1112  ;;  %2482 = vmatmul.mubr.msk.f32.vlgmr.msra.gmra.mxu0 %vm796_vm14, %v765_v48  ;;  %v1279_v55 = vpop.permute.xlu0 %1278 }
 0x14b   : > { %v1119_v53 = vsel %vm1116_vm0, %v1111_v43, %v1113_v52  ;;  %v1120_v58 = vsel %vm1116_vm0, %v1113_v52, %v1115_v44  ;;  %1360 = vmatprep.mubr.f32.mxu0 %v2565_v5 }
 0x14c   : > { %1229 = vmatprep.subr.mxu1 %v1120_v58 }
 0x14d   : > { %1230 = vmatpush1.msra.mxu1 %v1119_v53 }
 0x14e   : > { %v1277_v59 = vpop.permute.xlu1 %1276  ;;  %2483 = vmatmul.mubr.msk.f32.vlgmr.msra.gmra.mxu1 %vm796_vm14, %v765_v48  ;;  %v1281_v62 = vpop.permute.xlu0 %1280 }
 0x14f   : > { %v1286_v1 = vsel %vm1284_vm1, %v1277_v59, %v1279_v55  ;;  %1431 = vmatprep.mubr.f32.mxu1 %v2565_v5  ;;  %v1287_v60 = vsel %vm1284_vm1, %v1279_v55, %v1281_v62 }
 0x150   : > { %1326 = vmatprep.subr.mxu0 %v1286_v1 }
 0x152   : > { %v1275_v4 = vpop.permute.xlu1 %1274  ;;  %v1595_v8 = vpop.permute.xlu0 %1594 }
 0x153   : > { %v1285_v7 = vsel %vm1284_vm1, %v1275_v4, %v1277_v59 }
 0x154   : > { %1327 = vmatpush1.msra.mxu0 %v1285_v7 }
 0x155   : > { %2486 = vmatprep.subr.msk.mxu0 %vm2777_vm8, %v711_v57  ;;  %2484 = vmatmul.mubr.msk.f32.vlgmr.msra.gmra.mxu0 %vm796_vm14, %v766_v6  ;;  %v768_v57 = vld [vmem:[%s2985_s10 + $0x28] sm:$0xff] }
 0x156   : > { %v1283_v9 = vpop.permute.xlu1 %1282  ;;  %2487 = vmatpush1.msk.msra.mxu0 %vm2758_vm6, %v710_v54  ;;  %1509 = vmatprep.mubr.f32.mxu0 %v2565_v5  ;;  %v1593_v11 = vpop.permute.xlu0 %1592 }
 0x157   : > { %v1288_v47 = vsel %vm1284_vm1, %v1281_v62, %v1283_v9  ;;  %v1603_v50 = vsel %vm1602_vm2, %v1593_v11, %v1595_v8 }
 0x158   : > { %1397 = vmatprep.subr.mxu1 %v1288_v47 }
 0x159   : > { %1398 = vmatpush1.msra.mxu1 %v1287_v60  ;;  %2488 = vmatmul.mubr.msk.f32.vlgmr.msra.gmra.mxu0 %vm796_vm14, %v767_v10 }
 0x15a   : > { %v1597_v46 = vpop.permute.xlu1 %1596  ;;  %2489 = vmatprep.subr.msk.mxu1 %vm2783_vm9, %v713_v61  ;;  %2485 = vmatmul.mubr.msk.f32.vlgmr.msra.gmra.mxu1 %vm796_vm14, %v766_v6  ;;  %v1601_v49 = vpop.permute.xlu0 %1600 }
 0x15b   : > { %2490 = vmatpush1.msk.msra.mxu1 %vm2792_vm10, %v712_v0  ;;  %v1604_v54 = vsel %vm1602_vm2, %v1595_v8, %v1597_v46  ;;  %1580 = vmatprep.mubr.f32.mxu1 %v2565_v5 }
 0x15c   : > { %1644 = vmatprep.subr.mxu0 %v1604_v54  ;;  %1678 = vmatprep.mubr.f32.mxu0 %v2565_v5 }
 0x15d   : > { %1645 = vmatpush1.msra.mxu0 %v1603_v50 }
 0x15e   : > { %v1599_v61 = vpop.permute.xlu1 %1598  ;;  %2491 = vmatmul.mubr.msk.f32.vlgmr.msra.gmra.mxu1 %vm796_vm14, %v767_v10  ;;  %2492 = vmatmul.mubr.msk.f32.vlgmr.msra.gmra.mxu0 %vm796_vm14, %v768_v57  ;;  %v1765_v63 = vpop.permute.xlu0 %1764 }
 0x15f   : > { %v1605_v56 = vsel %vm1602_vm2, %v1597_v46, %v1599_v61  ;;  %v1606_v0 = vsel %vm1602_vm2, %v1599_v61, %v1601_v49  ;;  %1846 = vmatprep.mubr.f32.mxu0 %v2565_v5  ;;  %1749 = vmatprep.mubr.f32.mxu1 %v2565_v5 }
 0x160   : > { %1715 = vmatprep.subr.mxu1 %v1606_v0 }
 0x161   : > { %1716 = vmatpush1.msra.mxu1 %v1605_v56 }
 0x162   : > { %v1763_v2 = vpop.permute.xlu1 %1762  ;;  %2493 = vmatmul.mubr.msk.f32.vlgmr.msra.gmra.mxu1 %vm796_vm14, %v768_v57  ;;  %v1767_v12 = vpop.permute.xlu0 %1766 }
 0x163   : > { %v1772_v13 = vsel %vm1770_vm3, %v1763_v2, %v1765_v63  ;;  %1917 = vmatprep.mubr.f32.mxu1 %v2565_v5  ;;  %v1773_v26 = vsel %vm1770_vm3, %v1765_v63, %v1767_v12 }
 0x164   : > { %1812 = vmatprep.subr.mxu0 %v1772_v13 }
 0x166   : > { %v1761_v14 = vpop.permute.xlu1 %1760  ;;  %v1931_v19 = vpop.permute.xlu0 %1930 }
 0x167   : > { %v1771_v16 = vsel %vm1770_vm3, %v1761_v14, %v1763_v2 }
 0x168   : > { %1813 = vmatpush1.msra.mxu0 %v1771_v16  ;;  %v2278_v16 = vld [vmem:[%s2661_s22] sm:$0xf] }
 0x169   : > { %2494 = vmatmul.mubr.msk.f32.vlgmr.msra.gmra.mxu0 %vm796_vm14, %v769_v15  ;;  %vm2279_vm6 = vcmp.gt.f32.partialorder %v2278_v16, 0.5 }
 0x16a   : > { %v1769_v20 = vpop.permute.xlu1 %1768  ;;  %2014 = vmatprep.mubr.f32.mxu0 %v2565_v5  ;;  %v1929_v24 = vpop.permute.xlu0 %1928 }
 0x16b   : > { %v1774_v25 = vsel %vm1770_vm3, %v1767_v12, %v1769_v20  ;;  %v1939_v30 = vsel %vm1938_vm4, %v1929_v24, %v1931_v19 }
 0x16c   : > { %1883 = vmatprep.subr.mxu1 %v1774_v25 }
 0x16d   : > { %1884 = vmatpush1.msra.mxu1 %v1773_v26 }
 0x16e   : > { %v1933_v27 = vpop.permute.xlu1 %1932  ;;  %2495 = vmatmul.mubr.msk.f32.vlgmr.msra.gmra.mxu1 %vm796_vm14, %v769_v15  ;;  %v1937_v31 = vpop.permute.xlu0 %1936 }
 0x16f   : > { %v1940_v28 = vsel %vm1938_vm4, %v1931_v19, %v1933_v27  ;;  %2085 = vmatprep.mubr.f32.mxu1 %v2565_v5 }
 0x170   : > { %1980 = vmatprep.subr.mxu0 %v1940_v28 }
 0x171   : > { %1981 = vmatpush1.msra.mxu0 %v1939_v30 }
 0x172   : > { %v1935_v32 = vpop.permute.xlu1 %1934  ;;  %2496 = vmatmul.mubr.msk.f32.vlgmr.msra.gmra.mxu0 %vm796_vm14, %v770_v29  ;;  %v2101_v35 = vpop.permute.xlu0 %2100 }
 0x173   : > { %v1941_v33 = vsel %vm1938_vm4, %v1933_v27, %v1935_v32  ;;  %v1942_v34 = vsel %vm1938_vm4, %v1935_v32, %v1937_v31  ;;  %2182 = vmatprep.mubr.f32.mxu0 %v2565_v5  ;;  %v2280_v31 = vsel %vm2279_vm6, 1, %v2563_v3 }
 0x174   : > { %2051 = vmatprep.subr.mxu1 %v1942_v34 }
 0x175   : > { %2052 = vmatpush1.msra.mxu1 %v1941_v33 }
 0x176   : > { %v2099_v36 = vpop.permute.xlu1 %2098  ;;  %2497 = vmatmul.mubr.msk.f32.vlgmr.msra.gmra.mxu1 %vm796_vm14, %v770_v29  ;;  %v2103_v41 = vpop.permute.xlu0 %2102 }
 0x177   : > { %v2108_v37 = vsel %vm2106_vm5, %v2099_v36, %v2101_v35  ;;  %2253 = vmatprep.mubr.f32.mxu1 %v2565_v5  ;;  %v2109_v44 = vsel %vm2106_vm5, %v2101_v35, %v2103_v41 }
 0x178   : > { %2148 = vmatprep.subr.mxu0 %v2108_v37 }
 0x17a   : > { %v2097_v38 = vpop.permute.xlu1 %2096 }
 0x17b   : > { %v2107_v40 = vsel %vm2106_vm5, %v2097_v38, %v2099_v36  ;;  %v2284_v38 = vrot.slane %v2280_v31, %v2717_v18 }
 0x17c   : > { %2149 = vmatpush1.msra.mxu0 %v2107_v40 }
 0x17d   : > { %2498 = vmatmul.mubr.msk.f32.vlgmr.msra.gmra.mxu0 %vm796_vm14, %v771_v39  ;;  %vm2297_vm7 = vcmp.eq.s32.totalorder %v2284_v38, 1 }
 0x17e   : > { %v2105_v42 = vpop.permute.xlu1 %2104 }
 0x17f   : > { %v2110_v43 = vsel %vm2106_vm5, %v2103_v41, %v2105_v42 }
 0x180   : > { %2219 = vmatprep.subr.mxu1 %v2110_v43 }
 0x181   : > { %2220 = vmatpush1.msra.mxu1 %v2109_v44  ;;  %v2288_v44 = vrot.slane %v2280_v31, %v673_v21 }
 0x182   : > { %2499 = vmatmul.mubr.msk.f32.vlgmr.msra.gmra.mxu1 %vm796_vm14, %v771_v39 }
 0x183   : > { %v2268_v3 = vpop.permute.xlu0 %2267  ;;  %vm2298_vm8 = vcmp.eq.s32.totalorder %v2288_v44, 1 }
 0x1f6   : > { %v866_v5 = vpop.f32.mrf.mxu0 }
 0x1f8   : > { %v868_v45 = vpop.f32.mrf.mxu0 }
 0x1fa   : > { %v937_v48 = vpop.f32.mrf.mxu1 }
 0x1fc   : > { %v939_v52 = vpop.f32.mrf.mxu1 }
 0x201   : > { %v1030_v51 = vpop.f32.mrf.mxu0 }
 0x202   : > { %v1031_v47 = vadd.f32 %v1030_v51, %v866_v5 }
 0x203   : > { %v1032_v53 = vpop.f32.mrf.mxu0 }
 0x204   : > { %v1033_v49 = vadd.f32 %v1032_v53, %v868_v45 }
 0x206   : > { %v1101_v55 = vpop.f32.mrf.mxu1 }
 0x207   : > { %v1102_v50 = vadd.f32 %v1101_v55, %v937_v48 }
 0x208   : > { %v1103_v59 = vpop.f32.mrf.mxu1 }
 0x209   : > { %v1104_v0 = vadd.f32 %v1103_v59, %v939_v52 }
 0x20a   : > { %v1194_v58 = vpop.f32.mrf.mxu0 }
 0x20b   : > { %v1270_v54 = vadd.f32 %v1194_v58, %v1031_v47  ;;  %v2292_v58 = vrot.slane %v2280_v31, %v677_v23 }
 0x20c   : > { %v1196_v62 = vpop.f32.mrf.mxu0 }
 0x20d   : > { %v1271_v56 = vadd.f32 %v1196_v62, %v1033_v49  ;;  %vm2299_vm9 = vcmp.eq.s32.totalorder %v2292_v58, 1 }
 0x20e   : > { %v1265_v1 = vpop.f32.mrf.mxu1 }
 0x20f   : > { %v1272_v12 = vadd.f32 %v1265_v1, %v1102_v50 }
 0x210   : > { %v1267_v6 = vpop.f32.mrf.mxu1 }
 0x211   : > { %v1273_v19 = vadd.f32 %v1267_v6, %v1104_v0  ;;  %v2296_v6 = vrot.slane %v2280_v31, %v681_v22 }
 0x213   : > { %vm2300_vm10 = vcmp.eq.s32.totalorder %v2296_v6, 1 }
 0x215   : > { %v1362_v4 = vpop.f32.mrf.mxu0 }
 0x216   : > { %v1438_v63 = vadd.f32 %v1362_v4, %v1270_v54 }
 0x217   : > { %v1364_v7 = vpop.f32.mrf.mxu0 }
 0x218   : > { %v1439_v14 = vadd.f32 %v1364_v7, %v1271_v56 }
 0x219   : > { %v1511_v9 = vpop.f32.mrf.mxu0 }
 0x21a   : > { %v1433_v8 = vpop.f32.mrf.mxu1  ;;  %v1587_v15 = vadd.f32 %v1511_v9, %v1438_v63 }
 0x21b   : > { %v1513_v11 = vpop.f32.mrf.mxu0  ;;  %v1440_v24 = vadd.f32 %v1433_v8, %v1272_v12 }
 0x21c   : > { %v1435_v10 = vpop.f32.mrf.mxu1  ;;  %v1588_v26 = vadd.f32 %v1513_v11, %v1439_v14 }
 0x21d   : > { %v1441_v29 = vadd.f32 %v1435_v10, %v1273_v19 }
 0x21e   : > { %v1582_v60 = vpop.f32.mrf.mxu1  ;;  %v1680_v46 = vpop.f32.mrf.mxu0 }
 0x21f   : > { %v1756_v27 = vadd.f32 %v1680_v46, %v1587_v15  ;;  %v1589_v32 = vadd.f32 %v1582_v60, %v1440_v24 }
 0x220   : > { %v1584_v57 = vpop.f32.mrf.mxu1  ;;  %v1682_v61 = vpop.f32.mrf.mxu0 }
 0x221   : > { %v1757_v33 = vadd.f32 %v1682_v61, %v1588_v26  ;;  %v1590_v36 = vadd.f32 %v1584_v57, %v1441_v29 }
 0x222   : > { %v1751_v2 = vpop.f32.mrf.mxu1 }
 0x223   : > { %v1758_v42 = vadd.f32 %v1751_v2, %v1589_v32  ;;  %v2305_v2 = vld [vmem:[%s2965_s13] sm:$0xff] }
 0x224   : > { %v1753_v20 = vpop.f32.mrf.mxu1 }
 0x225   : > { %v1759_v48 = vadd.f32 %v1753_v20, %v1590_v36 }
 0x229   : > { %v1848_v13 = vpop.f32.mrf.mxu0 }
 0x22a   : > { %v1924_v34 = vadd.f32 %v1848_v13, %v1756_v27  ;;  %v2313_v13 = vld [vmem:[%s2966_s14] sm:$0xff] }
 0x22b   : > { %v1850_v25 = vpop.f32.mrf.mxu0 }
 0x22c   : > { %v1925_v39 = vadd.f32 %v1850_v25, %v1757_v33 }
 0x22e   : > { %v1919_v28 = vpop.f32.mrf.mxu1 }
 0x22f   : > { %v1926_v51 = vadd.f32 %v1919_v28, %v1758_v42 }
 0x230   : > { %v1921_v35 = vpop.f32.mrf.mxu1 }
 0x231   : > { %v1927_v59 = vadd.f32 %v1921_v35, %v1759_v48 }
 0x232   : > { %v2016_v30 = vpop.f32.mrf.mxu0 }
 0x233   : > { %v2092_v40 = vadd.f32 %v2016_v30, %v1924_v34 }
 0x234   : > { %v2018_v37 = vpop.f32.mrf.mxu0 }
 0x235   : > { %v2093_v5 = vadd.f32 %v2018_v37, %v1925_v39 }
 0x236   : > { %v2087_v41 = vpop.f32.mrf.mxu1 }
 0x237   : > { %v2094_v62 = vadd.f32 %v2087_v41, %v1926_v51 }
 0x238   : > { %v2089_v53 = vpop.f32.mrf.mxu1 }
 0x239   : > { %v2095_v7 = vadd.f32 %v2089_v53, %v1927_v59 }
 0x23d   : > { %v2184_v43 = vpop.f32.mrf.mxu0 }
 0x23e   : > { %v2260_v45 = vadd.f32 %v2184_v43, %v2092_v40 }
 0x23f   : > { %v2186_v52 = vpop.f32.mrf.mxu0 }
 0x240   : > { %v2270_v55 = vadd.f32 %v2268_v3, %v2260_v45  ;;  %v2261_v18 = vadd.f32 %v2186_v52, %v2093_v5 }
 0x242   : > { %2274 = vst [vmem:[%s2683_s21] sm:$0xff] %v2270_v55  ;;  %v2301_v1 = vsel %vm2297_vm7, %v2270_v55, 0.0  ;;  %v2271_v21 = vadd.f32 %v2268_v3, %v2261_v18  ;;  %v2255_v4 = vpop.f32.mrf.mxu1 }
 0x243   : > { %v2262_v8 = vadd.f32 %v2255_v4, %v2094_v62  ;;  %v2314_v9 = vmul.f32 %v2301_v1, %v2301_v1 }
 0x244   : > { %2275 = vst [vmem:[%s2683_s21 + $0x8] sm:$0xff] %v2271_v21  ;;  %v2302_v10 = vsel %vm2298_vm8, %v2271_v21, 0.0  ;;  %v2257_v11 = vpop.f32.mrf.mxu1 }
 0x245   : > { %v2315_v23 = vmul.f32 %v2302_v10, %v2302_v10  ;;  %v2272_v47 = vadd.f32 %v2268_v3, %v2262_v8  ;;  %v2263_v60 = vadd.f32 %v2257_v11, %v2095_v7  ;;  %v2306_v46 = vadd.f32 %v2302_v10, %v2301_v1 }
 0x247   : > { %2276 = vst [vmem:[%s2683_s21 + $0x10] sm:$0xff] %v2272_v47  ;;  %v2273_v49 = vadd.f32 %v2268_v3, %v2263_v60  ;;  %v2303_v54 = vsel %vm2299_vm9, %v2272_v47, 0.0  ;;  %v2318_v57 = vadd.f32 %v2315_v23, %v2314_v9 }
 0x248   : > { %v2307_v50 = vadd.f32 %v2306_v46, %v2303_v54  ;;  %v2316_v17 = vmul.f32 %v2303_v54, %v2303_v54 }
 0x249   : > { %2277 = vst [vmem:[%s2683_s21 + $0x18] sm:$0xff] %v2273_v49  ;;  %v2304_v22 = vsel %vm2300_vm10, %v2273_v49, 0.0 }
 0x24a   : > { %v2308_v61 = vadd.f32 %v2307_v50, %v2304_v22  ;;  %v2317_v56 = vmul.f32 %v2304_v22, %v2304_v22  ;;  %v2319_v63 = vadd.f32 %v2318_v57, %v2316_v17 }
 0x24c   : > { %2309 = vadd.xlane.f32.xlu1 %v2308_v61  ;;  %v2320_v0 = vadd.f32 %v2319_v63, %v2317_v56 }
 0x24e   : > { %2321 = vadd.xlane.f32.xlu0 %v2320_v0 }
 0x2d5   : > { %v2310_v12 = vpop.xlane.xlu1 %2309 }
 0x2d6   : > { %v2311_v14 = vadd.f32 %v2310_v12, %v2305_v2 }
 0x2d7   : > { %v2322_v15 = vpop.xlane.xlu0 %2321 }
 0x2d8   : > { %2312 = vst.msk [vmem:[%s2965_s13] sm:$0xff] %vm1284_vm1, %v2311_v14  ;;  %v2323_v16 = vadd.f32 %v2322_v15, %v2313_v13 }
 0x2da   : > { %2324 = vst.msk [vmem:[%s2966_s14] sm:$0xff] %vm1284_vm1, %v2323_v16 }
 0x2db PF: > { %s2986_s15 = sld [smem:[#allocation2_spill]] }
 0x2e1   : > { %s25_s29 = sadd.s32 1, %s2986_s15  }
 0x2e2   : > { %p22_p7 = scmp.ge.s32.totalorder %s25_s29, 4  }
 0x2e4   :  { %24 = sbr.rel (!%p22_p7) target bundleno = 5 (0x5), region = 133 }

</bundles_post_ra>
